<compile_context>
chip_gen: v7x
topology: tpu7x:2x2x1
jax: 0.10.0
libtpu: 0.0.40
codegen_flags: <defaults>
</compile_context>

<pallas_src>
import jax
import jax.numpy as jnp
from jax.experimental import pallas as pl
from jax.experimental.pallas import tpu as pltpu


def fce_kernel(f_ref, g_ref, gT_ref, wfT_ref, wrT_ref, whT_ref, b_ref, h_out_ref):
    f = f_ref[...].astype(jnp.float32)        # (N, D)
    G = g_ref[...].astype(jnp.float32)        # (K, D)
    G_T = gT_ref[...].astype(jnp.float32)     # (D, K)   pre-transposed support set
    WfT = wfT_ref[...].astype(jnp.float32)    # (D, 4D)  f-half of W_ih, transposed
    WrT = wrT_ref[...].astype(jnp.float32)    # (D, 4D)  r-half of W_ih, transposed
    WhT = whT_ref[...].astype(jnp.float32)    # (D, 4D)  W_hh, transposed
    bias = b_ref[...].astype(jnp.float32)     # (1, 4D)  b_ih + b_hh

    N, D = f.shape
    K = G.shape[0]

    # Loop-invariant gate pre-activation term (one lane-dense matmul, hoisted).
    gates_const = jnp.dot(f, WfT, preferred_element_type=jnp.float32) + bias   # (N, 4D)
    # Fold the readout matmul into the weights:  r @ Wr^T == a @ (G @ Wr^T).
    GWr = jnp.dot(G, WrT, preferred_element_type=jnp.float32)                  # (K, 4D)

    h = f
    c = jnp.zeros_like(f)

    for _ in range(K):                        # K is static and small -> unrolled
        # attention over the support set
        logits = jnp.dot(h, G_T, preferred_element_type=jnp.float32)           # (N, K)
        m = jnp.max(logits, axis=1, keepdims=True)
        e = jnp.exp(logits - m)
        inv_denom = pl.reciprocal(jnp.sum(e, axis=1, keepdims=True), approx=True)
        a = e * inv_denom

        # LSTM gate pre-activations: all four gates in one lane-stacked block.
        pre = (gates_const
               + jnp.dot(a, GWr, preferred_element_type=jnp.float32)
               + jnp.dot(h, WhT, preferred_element_type=jnp.float32))          # (N, 4D)

        i_g = jax.nn.sigmoid(pre[:, 0 * D:1 * D])
        f_g = jax.nn.sigmoid(pre[:, 1 * D:2 * D])
        g_g = jnp.tanh(pre[:, 2 * D:3 * D])
        o_g = jax.nn.sigmoid(pre[:, 3 * D:4 * D])

        c = f_g * c + i_g * g_g
        h = o_g * jnp.tanh(c) + f             # residual add from the module

    h_out_ref[...] = h.astype(h_out_ref.dtype)


def fully_contextual_embedding(f, G, w_ih, w_hh, b_ih, b_hh):
    """f: (N, D), G: (K, D), w_ih: (4D, 2D), w_hh: (4D, D), b_*: (4D,)."""
    N, D = f.shape

    # Pre-transpose / restructure constant operands once, outside the kernel.
    G_T = jnp.transpose(G)                    # (D, K)
    WfT = jnp.transpose(w_ih[:, :D])          # (D, 4D): gate g lives in lanes g*D:(g+1)*D
    WrT = jnp.transpose(w_ih[:, D:])          # (D, 4D)
    WhT = jnp.transpose(w_hh)                 # (D, 4D)
    bias = (b_ih + b_hh).reshape(1, 4 * D)    # combined bias, lane-stacked per gate

    vmem = pl.BlockSpec(memory_space=pltpu.MemorySpace.VMEM)
    return pl.pallas_call(
        fce_kernel,
        out_shape=jax.ShapeDtypeStruct((N, D), jnp.float32),
        in_specs=[vmem] * 7,
        out_specs=vmem,
    )(f, G, G_T, WfT, WrT, WhT, bias)


def fce_reference(f, G, w_ih, w_hh, b_ih, b_hh):
    """Pure-JAX reference mirroring the PyTorch forward (exact softmax divide)."""
    D = f.shape[1]
    h = f
    c = jnp.zeros_like(f)
    b = b_ih + b_hh
    for _ in range(G.shape[0]):
        logit = h @ G.T
        a = jax.nn.softmax(logit, axis=1)
        r = a @ G
        x = jnp.concatenate([f, r], axis=1)
        gates = x @ w_ih.T + h @ w_hh.T + b
        i_g = jax.nn.sigmoid(gates[:, 0 * D:1 * D])
        f_g = jax.nn.sigmoid(gates[:, 1 * D:2 * D])
        g_g = jnp.tanh(gates[:, 2 * D:3 * D])
        o_g = jax.nn.sigmoid(gates[:, 3 * D:4 * D])
        c = f_g * c + i_g * g_g
        h = o_g * jnp.tanh(c)
        h = h + f
    return h


if __name__ == "__main__":
    feat_dim = 32   # D
    N = 4           # number of query embeddings (rows of f)
    K = 8           # number of support embeddings (rows of G)

    key = jax.random.PRNGKey(0)
    kf, kg, k1, k2, k3, k4 = jax.random.split(key, 6)

    f = jax.random.normal(kf, (N, feat_dim), dtype=jnp.float32)
    G = jax.random.normal(kg, (K, feat_dim), dtype=jnp.float32)

    # Deterministic LSTMCell params, PyTorch-style uniform(-1/sqrt(D), 1/sqrt(D))
    bound = 1.0 / jnp.sqrt(jnp.float32(feat_dim))
    w_ih = jax.random.uniform(k1, (4 * feat_dim, 2 * feat_dim),
                              minval=-bound, maxval=bound, dtype=jnp.float32)
    w_hh = jax.random.uniform(k2, (4 * feat_dim, feat_dim),
                              minval=-bound, maxval=bound, dtype=jnp.float32)
    b_ih = jax.random.uniform(k3, (4 * feat_dim,),
                              minval=-bound, maxval=bound, dtype=jnp.float32)
    b_hh = jax.random.uniform(k4, (4 * feat_dim,),
                              minval=-bound, maxval=bound, dtype=jnp.float32)

    out = fully_contextual_embedding(f, G, w_ih, w_hh, b_ih, b_hh)
    out = jax.block_until_ready(out)

    ref = fce_reference(f, G, w_ih, w_hh, b_ih, b_hh)
    assert out.shape == (N, feat_dim)
    # approx-reciprocal softmax (EUP) gives ~1e-3-level deviation vs exact divide
    assert jnp.allclose(out, ref, atol=2e-3, rtol=2e-3), "mismatch vs reference"

    print("KERNEL_OK")
</pallas_src>

<mosaic_0001>
module attributes {stable_mosaic.version = 11 : i64} {
  func.func @fce_kernel(%arg0: memref<4x32xf32, #tpu.memory_space<vmem>>, %arg1: memref<8x32xf32, #tpu.memory_space<vmem>>, %arg2: memref<32x8xf32, #tpu.memory_space<vmem>>, %arg3: memref<32x128xf32, #tpu.memory_space<vmem>>, %arg4: memref<32x128xf32, #tpu.memory_space<vmem>>, %arg5: memref<32x128xf32, #tpu.memory_space<vmem>>, %arg6: memref<1x128xf32, #tpu.memory_space<vmem>>, %arg7: memref<4x32xf32, #tpu.memory_space<vmem>>) attributes {dimension_semantics = [], scalar_prefetch = 0 : i64, scratch_operands = 0 : i64, tpu.core_type = #tpu.core_type<tc>} {
    %c0 = arith.constant 0 : index
    %c0_0 = arith.constant 0 : index
    %0 = vector.load %arg0[%c0, %c0_0] : memref<4x32xf32, #tpu.memory_space<vmem>>, vector<4x32xf32>
    %c0_1 = arith.constant 0 : index
    %c0_2 = arith.constant 0 : index
    %1 = vector.load %arg1[%c0_1, %c0_2] : memref<8x32xf32, #tpu.memory_space<vmem>>, vector<8x32xf32>
    %c0_3 = arith.constant 0 : index
    %c0_4 = arith.constant 0 : index
    %2 = vector.load %arg2[%c0_3, %c0_4] : memref<32x8xf32, #tpu.memory_space<vmem>>, vector<32x8xf32>
    %c0_5 = arith.constant 0 : index
    %c0_6 = arith.constant 0 : index
    %3 = vector.load %arg3[%c0_5, %c0_6] : memref<32x128xf32, #tpu.memory_space<vmem>>, vector<32x128xf32>
    %c0_7 = arith.constant 0 : index
    %c0_8 = arith.constant 0 : index
    %4 = vector.load %arg4[%c0_7, %c0_8] : memref<32x128xf32, #tpu.memory_space<vmem>>, vector<32x128xf32>
    %c0_9 = arith.constant 0 : index
    %c0_10 = arith.constant 0 : index
    %5 = vector.load %arg5[%c0_9, %c0_10] : memref<32x128xf32, #tpu.memory_space<vmem>>, vector<32x128xf32>
    %c0_11 = arith.constant 0 : index
    %c0_12 = arith.constant 0 : index
    %6 = vector.load %arg6[%c0_11, %c0_12] : memref<1x128xf32, #tpu.memory_space<vmem>>, vector<1x128xf32>
    %cst = arith.constant dense<0.000000e+00> : vector<4x128xf32>
    %7 = tpu.matmul %0, %3, %cst {dimension_numbers = #tpu.dot_dimension_numbers<[1], [0], [0], [1], [0, 0, 1, 1], [], []>} : vector<4x32xf32>, vector<32x128xf32>, vector<4x128xf32> -> vector<4x128xf32>
    %8 = vector.broadcast %6 : vector<1x128xf32> to vector<4x128xf32>
    %9 = arith.addf %7, %8 : vector<4x128xf32>
    %cst_13 = arith.constant dense<0.000000e+00> : vector<8x128xf32>
    %10 = tpu.matmul %1, %4, %cst_13 {dimension_numbers = #tpu.dot_dimension_numbers<[1], [0], [0], [1], [0, 0, 1, 1], [], []>} : vector<8x32xf32>, vector<32x128xf32>, vector<8x128xf32> -> vector<8x128xf32>
    %cst_14 = arith.constant 0.000000e+00 : f32
    %11 = vector.broadcast %cst_14 : f32 to vector<4x32xf32>
    %cst_15 = arith.constant dense<0.000000e+00> : vector<4x8xf32>
    %12 = tpu.matmul %0, %2, %cst_15 {dimension_numbers = #tpu.dot_dimension_numbers<[1], [0], [0], [1], [0, 0, 1, 1], [], []>} : vector<4x32xf32>, vector<32x8xf32>, vector<4x8xf32> -> vector<4x8xf32>
    %cst_16 = arith.constant dense<0xFF800000> : vector<4xf32>
    %13 = vector.multi_reduction <maximumf>, %12, %cst_16 [1] : vector<4x8xf32> to vector<4xf32>
    %14 = vector.shape_cast %13 : vector<4xf32> to vector<4x1xf32>
    %15 = vector.broadcast %14 : vector<4x1xf32> to vector<4x8xf32>
    %16 = arith.subf %12, %15 : vector<4x8xf32>
    %17 = math.exp %16 : vector<4x8xf32>
    %cst_17 = arith.constant dense<0.000000e+00> : vector<4xf32>
    %18 = vector.multi_reduction <add>, %17, %cst_17 [1] : vector<4x8xf32> to vector<4xf32>
    %19 = vector.shape_cast %18 : vector<4xf32> to vector<4x1xf32>
    %20 = tpu.reciprocal %19 {approx = true} : vector<4x1xf32> -> vector<4x1xf32>
    %21 = vector.broadcast %20 : vector<4x1xf32> to vector<4x8xf32>
    %22 = arith.mulf %17, %21 : vector<4x8xf32>
    %cst_18 = arith.constant dense<0.000000e+00> : vector<4x128xf32>
    %23 = tpu.matmul %22, %10, %cst_18 {dimension_numbers = #tpu.dot_dimension_numbers<[1], [0], [0], [1], [0, 0, 1, 1], [], []>} : vector<4x8xf32>, vector<8x128xf32>, vector<4x128xf32> -> vector<4x128xf32>
    %24 = arith.addf %9, %23 : vector<4x128xf32>
    %cst_19 = arith.constant dense<0.000000e+00> : vector<4x128xf32>
    %25 = tpu.matmul %0, %5, %cst_19 {dimension_numbers = #tpu.dot_dimension_numbers<[1], [0], [0], [1], [0, 0, 1, 1], [], []>} : vector<4x32xf32>, vector<32x128xf32>, vector<4x128xf32> -> vector<4x128xf32>
    %26 = arith.addf %24, %25 : vector<4x128xf32>
    %27 = vector.extract_strided_slice %26 {offsets = [0, 0], sizes = [4, 32], strides = [1, 1]} : vector<4x128xf32> to vector<4x32xf32>
    %28 = arith.negf %27 : vector<4x32xf32>
    %29 = math.exp %28 : vector<4x32xf32>
    %cst_20 = arith.constant 1.000000e+00 : f32
    %30 = vector.broadcast %cst_20 : f32 to vector<4x32xf32>
    %31 = arith.addf %30, %29 : vector<4x32xf32>
    %32 = arith.divf %30, %31 : vector<4x32xf32>
    %33 = vector.extract_strided_slice %26 {offsets = [0, 32], sizes = [4, 32], strides = [1, 1]} : vector<4x128xf32> to vector<4x32xf32>
    %34 = arith.negf %33 : vector<4x32xf32>
    %35 = math.exp %34 : vector<4x32xf32>
    %cst_21 = arith.constant 1.000000e+00 : f32
    %36 = vector.broadcast %cst_21 : f32 to vector<4x32xf32>
    %37 = arith.addf %36, %35 : vector<4x32xf32>
    %38 = arith.divf %36, %37 : vector<4x32xf32>
    %39 = vector.extract_strided_slice %26 {offsets = [0, 64], sizes = [4, 32], strides = [1, 1]} : vector<4x128xf32> to vector<4x32xf32>
    %40 = math.tanh %39 : vector<4x32xf32>
    %41 = vector.extract_strided_slice %26 {offsets = [0, 96], sizes = [4, 32], strides = [1, 1]} : vector<4x128xf32> to vector<4x32xf32>
    %42 = arith.negf %41 : vector<4x32xf32>
    %43 = math.exp %42 : vector<4x32xf32>
    %cst_22 = arith.constant 1.000000e+00 : f32
    %44 = vector.broadcast %cst_22 : f32 to vector<4x32xf32>
    %45 = arith.addf %44, %43 : vector<4x32xf32>
    %46 = arith.divf %44, %45 : vector<4x32xf32>
    %47 = arith.mulf %38, %11 : vector<4x32xf32>
    %48 = arith.mulf %32, %40 : vector<4x32xf32>
    %49 = arith.addf %47, %48 : vector<4x32xf32>
    %50 = math.tanh %49 : vector<4x32xf32>
    %51 = arith.mulf %46, %50 : vector<4x32xf32>
    %52 = arith.addf %51, %0 : vector<4x32xf32>
    %cst_23 = arith.constant dense<0.000000e+00> : vector<4x8xf32>
    %53 = tpu.matmul %52, %2, %cst_23 {dimension_numbers = #tpu.dot_dimension_numbers<[1], [0], [0], [1], [0, 0, 1, 1], [], []>} : vector<4x32xf32>, vector<32x8xf32>, vector<4x8xf32> -> vector<4x8xf32>
    %cst_24 = arith.constant dense<0xFF800000> : vector<4xf32>
    %54 = vector.multi_reduction <maximumf>, %53, %cst_24 [1] : vector<4x8xf32> to vector<4xf32>
    %55 = vector.shape_cast %54 : vector<4xf32> to vector<4x1xf32>
    %56 = vector.broadcast %55 : vector<4x1xf32> to vector<4x8xf32>
    %57 = arith.subf %53, %56 : vector<4x8xf32>
    %58 = math.exp %57 : vector<4x8xf32>
    %cst_25 = arith.constant dense<0.000000e+00> : vector<4xf32>
    %59 = vector.multi_reduction <add>, %58, %cst_25 [1] : vector<4x8xf32> to vector<4xf32>
    %60 = vector.shape_cast %59 : vector<4xf32> to vector<4x1xf32>
    %61 = tpu.reciprocal %60 {approx = true} : vector<4x1xf32> -> vector<4x1xf32>
    %62 = vector.broadcast %61 : vector<4x1xf32> to vector<4x8xf32>
    %63 = arith.mulf %58, %62 : vector<4x8xf32>
    %cst_26 = arith.constant dense<0.000000e+00> : vector<4x128xf32>
    %64 = tpu.matmul %63, %10, %cst_26 {dimension_numbers = #tpu.dot_dimension_numbers<[1], [0], [0], [1], [0, 0, 1, 1], [], []>} : vector<4x8xf32>, vector<8x128xf32>, vector<4x128xf32> -> vector<4x128xf32>
    %65 = arith.addf %9, %64 : vector<4x128xf32>
    %cst_27 = arith.constant dense<0.000000e+00> : vector<4x128xf32>
    %66 = tpu.matmul %52, %5, %cst_27 {dimension_numbers = #tpu.dot_dimension_numbers<[1], [0], [0], [1], [0, 0, 1, 1], [], []>} : vector<4x32xf32>, vector<32x128xf32>, vector<4x128xf32> -> vector<4x128xf32>
    %67 = arith.addf %65, %66 : vector<4x128xf32>
    %68 = vector.extract_strided_slice %67 {offsets = [0, 0], sizes = [4, 32], strides = [1, 1]} : vector<4x128xf32> to vector<4x32xf32>
    %69 = arith.negf %68 : vector<4x32xf32>
    %70 = math.exp %69 : vector<4x32xf32>
    %cst_28 = arith.constant 1.000000e+00 : f32
    %71 = vector.broadcast %cst_28 : f32 to vector<4x32xf32>
    %72 = arith.addf %71, %70 : vector<4x32xf32>
    %73 = arith.divf %71, %72 : vector<4x32xf32>
    %74 = vector.extract_strided_slice %67 {offsets = [0, 32], sizes = [4, 32], strides = [1, 1]} : vector<4x128xf32> to vector<4x32xf32>
    %75 = arith.negf %74 : vector<4x32xf32>
    %76 = math.exp %75 : vector<4x32xf32>
    %cst_29 = arith.constant 1.000000e+00 : f32
    %77 = vector.broadcast %cst_29 : f32 to vector<4x32xf32>
    %78 = arith.addf %77, %76 : vector<4x32xf32>
    %79 = arith.divf %77, %78 : vector<4x32xf32>
    %80 = vector.extract_strided_slice %67 {offsets = [0, 64], sizes = [4, 32], strides = [1, 1]} : vector<4x128xf32> to vector<4x32xf32>
    %81 = math.tanh %80 : vector<4x32xf32>
    %82 = vector.extract_strided_slice %67 {offsets = [0, 96], sizes = [4, 32], strides = [1, 1]} : vector<4x128xf32> to vector<4x32xf32>
    %83 = arith.negf %82 : vector<4x32xf32>
    %84 = math.exp %83 : vector<4x32xf32>
    %cst_30 = arith.constant 1.000000e+00 : f32
    %85 = vector.broadcast %cst_30 : f32 to vector<4x32xf32>
    %86 = arith.addf %85, %84 : vector<4x32xf32>
    %87 = arith.divf %85, %86 : vector<4x32xf32>
    %88 = arith.mulf %79, %49 : vector<4x32xf32>
    %89 = arith.mulf %73, %81 : vector<4x32xf32>
    %90 = arith.addf %88, %89 : vector<4x32xf32>
    %91 = math.tanh %90 : vector<4x32xf32>
    %92 = arith.mulf %87, %91 : vector<4x32xf32>
    %93 = arith.addf %92, %0 : vector<4x32xf32>
    %cst_31 = arith.constant dense<0.000000e+00> : vector<4x8xf32>
    %94 = tpu.matmul %93, %2, %cst_31 {dimension_numbers = #tpu.dot_dimension_numbers<[1], [0], [0], [1], [0, 0, 1, 1], [], []>} : vector<4x32xf32>, vector<32x8xf32>, vector<4x8xf32> -> vector<4x8xf32>
    %cst_32 = arith.constant dense<0xFF800000> : vector<4xf32>
    %95 = vector.multi_reduction <maximumf>, %94, %cst_32 [1] : vector<4x8xf32> to vector<4xf32>
    %96 = vector.shape_cast %95 : vector<4xf32> to vector<4x1xf32>
    %97 = vector.broadcast %96 : vector<4x1xf32> to vector<4x8xf32>
    %98 = arith.subf %94, %97 : vector<4x8xf32>
    %99 = math.exp %98 : vector<4x8xf32>
    %cst_33 = arith.constant dense<0.000000e+00> : vector<4xf32>
    %100 = vector.multi_reduction <add>, %99, %cst_33 [1] : vector<4x8xf32> to vector<4xf32>
    %101 = vector.shape_cast %100 : vector<4xf32> to vector<4x1xf32>
    %102 = tpu.reciprocal %101 {approx = true} : vector<4x1xf32> -> vector<4x1xf32>
    %103 = vector.broadcast %102 : vector<4x1xf32> to vector<4x8xf32>
    %104 = arith.mulf %99, %103 : vector<4x8xf32>
    %cst_34 = arith.constant dense<0.000000e+00> : vector<4x128xf32>
    %105 = tpu.matmul %104, %10, %cst_34 {dimension_numbers = #tpu.dot_dimension_numbers<[1], [0], [0], [1], [0, 0, 1, 1], [], []>} : vector<4x8xf32>, vector<8x128xf32>, vector<4x128xf32> -> vector<4x128xf32>
    %106 = arith.addf %9, %105 : vector<4x128xf32>
    %cst_35 = arith.constant dense<0.000000e+00> : vector<4x128xf32>
    %107 = tpu.matmul %93, %5, %cst_35 {dimension_numbers = #tpu.dot_dimension_numbers<[1], [0], [0], [1], [0, 0, 1, 1], [], []>} : vector<4x32xf32>, vector<32x128xf32>, vector<4x128xf32> -> vector<4x128xf32>
    %108 = arith.addf %106, %107 : vector<4x128xf32>
    %109 = vector.extract_strided_slice %108 {offsets = [0, 0], sizes = [4, 32], strides = [1, 1]} : vector<4x128xf32> to vector<4x32xf32>
    %110 = arith.negf %109 : vector<4x32xf32>
    %111 = math.exp %110 : vector<4x32xf32>
    %cst_36 = arith.constant 1.000000e+00 : f32
    %112 = vector.broadcast %cst_36 : f32 to vector<4x32xf32>
    %113 = arith.addf %112, %111 : vector<4x32xf32>
    %114 = arith.divf %112, %113 : vector<4x32xf32>
    %115 = vector.extract_strided_slice %108 {offsets = [0, 32], sizes = [4, 32], strides = [1, 1]} : vector<4x128xf32> to vector<4x32xf32>
    %116 = arith.negf %115 : vector<4x32xf32>
    %117 = math.exp %116 : vector<4x32xf32>
    %cst_37 = arith.constant 1.000000e+00 : f32
    %118 = vector.broadcast %cst_37 : f32 to vector<4x32xf32>
    %119 = arith.addf %118, %117 : vector<4x32xf32>
    %120 = arith.divf %118, %119 : vector<4x32xf32>
    %121 = vector.extract_strided_slice %108 {offsets = [0, 64], sizes = [4, 32], strides = [1, 1]} : vector<4x128xf32> to vector<4x32xf32>
    %122 = math.tanh %121 : vector<4x32xf32>
    %123 = vector.extract_strided_slice %108 {offsets = [0, 96], sizes = [4, 32], strides = [1, 1]} : vector<4x128xf32> to vector<4x32xf32>
    %124 = arith.negf %123 : vector<4x32xf32>
    %125 = math.exp %124 : vector<4x32xf32>
    %cst_38 = arith.constant 1.000000e+00 : f32
    %126 = vector.broadcast %cst_38 : f32 to vector<4x32xf32>
    %127 = arith.addf %126, %125 : vector<4x32xf32>
    %128 = arith.divf %126, %127 : vector<4x32xf32>
    %129 = arith.mulf %120, %90 : vector<4x32xf32>
    %130 = arith.mulf %114, %122 : vector<4x32xf32>
    %131 = arith.addf %129, %130 : vector<4x32xf32>
    %132 = math.tanh %131 : vector<4x32xf32>
    %133 = arith.mulf %128, %132 : vector<4x32xf32>
    %134 = arith.addf %133, %0 : vector<4x32xf32>
    %cst_39 = arith.constant dense<0.000000e+00> : vector<4x8xf32>
    %135 = tpu.matmul %134, %2, %cst_39 {dimension_numbers = #tpu.dot_dimension_numbers<[1], [0], [0], [1], [0, 0, 1, 1], [], []>} : vector<4x32xf32>, vector<32x8xf32>, vector<4x8xf32> -> vector<4x8xf32>
    %cst_40 = arith.constant dense<0xFF800000> : vector<4xf32>
    %136 = vector.multi_reduction <maximumf>, %135, %cst_40 [1] : vector<4x8xf32> to vector<4xf32>
    %137 = vector.shape_cast %136 : vector<4xf32> to vector<4x1xf32>
    %138 = vector.broadcast %137 : vector<4x1xf32> to vector<4x8xf32>
    %139 = arith.subf %135, %138 : vector<4x8xf32>
    %140 = math.exp %139 : vector<4x8xf32>
    %cst_41 = arith.constant dense<0.000000e+00> : vector<4xf32>
    %141 = vector.multi_reduction <add>, %140, %cst_41 [1] : vector<4x8xf32> to vector<4xf32>
    %142 = vector.shape_cast %141 : vector<4xf32> to vector<4x1xf32>
    %143 = tpu.reciprocal %142 {approx = true} : vector<4x1xf32> -> vector<4x1xf32>
    %144 = vector.broadcast %143 : vector<4x1xf32> to vector<4x8xf32>
    %145 = arith.mulf %140, %144 : vector<4x8xf32>
    %cst_42 = arith.constant dense<0.000000e+00> : vector<4x128xf32>
    %146 = tpu.matmul %145, %10, %cst_42 {dimension_numbers = #tpu.dot_dimension_numbers<[1], [0], [0], [1], [0, 0, 1, 1], [], []>} : vector<4x8xf32>, vector<8x128xf32>, vector<4x128xf32> -> vector<4x128xf32>
    %147 = arith.addf %9, %146 : vector<4x128xf32>
    %cst_43 = arith.constant dense<0.000000e+00> : vector<4x128xf32>
    %148 = tpu.matmul %134, %5, %cst_43 {dimension_numbers = #tpu.dot_dimension_numbers<[1], [0], [0], [1], [0, 0, 1, 1], [], []>} : vector<4x32xf32>, vector<32x128xf32>, vector<4x128xf32> -> vector<4x128xf32>
    %149 = arith.addf %147, %148 : vector<4x128xf32>
    %150 = vector.extract_strided_slice %149 {offsets = [0, 0], sizes = [4, 32], strides = [1, 1]} : vector<4x128xf32> to vector<4x32xf32>
    %151 = arith.negf %150 : vector<4x32xf32>
    %152 = math.exp %151 : vector<4x32xf32>
    %cst_44 = arith.constant 1.000000e+00 : f32
    %153 = vector.broadcast %cst_44 : f32 to vector<4x32xf32>
    %154 = arith.addf %153, %152 : vector<4x32xf32>
    %155 = arith.divf %153, %154 : vector<4x32xf32>
    %156 = vector.extract_strided_slice %149 {offsets = [0, 32], sizes = [4, 32], strides = [1, 1]} : vector<4x128xf32> to vector<4x32xf32>
    %157 = arith.negf %156 : vector<4x32xf32>
    %158 = math.exp %157 : vector<4x32xf32>
    %cst_45 = arith.constant 1.000000e+00 : f32
    %159 = vector.broadcast %cst_45 : f32 to vector<4x32xf32>
    %160 = arith.addf %159, %158 : vector<4x32xf32>
    %161 = arith.divf %159, %160 : vector<4x32xf32>
    %162 = vector.extract_strided_slice %149 {offsets = [0, 64], sizes = [4, 32], strides = [1, 1]} : vector<4x128xf32> to vector<4x32xf32>
    %163 = math.tanh %162 : vector<4x32xf32>
    %164 = vector.extract_strided_slice %149 {offsets = [0, 96], sizes = [4, 32], strides = [1, 1]} : vector<4x128xf32> to vector<4x32xf32>
    %165 = arith.negf %164 : vector<4x32xf32>
    %166 = math.exp %165 : vector<4x32xf32>
    %cst_46 = arith.constant 1.000000e+00 : f32
    %167 = vector.broadcast %cst_46 : f32 to vector<4x32xf32>
    %168 = arith.addf %167, %166 : vector<4x32xf32>
    %169 = arith.divf %167, %168 : vector<4x32xf32>
    %170 = arith.mulf %161, %131 : vector<4x32xf32>
    %171 = arith.mulf %155, %163 : vector<4x32xf32>
    %172 = arith.addf %170, %171 : vector<4x32xf32>
    %173 = math.tanh %172 : vector<4x32xf32>
    %174 = arith.mulf %169, %173 : vector<4x32xf32>
    %175 = arith.addf %174, %0 : vector<4x32xf32>
    %cst_47 = arith.constant dense<0.000000e+00> : vector<4x8xf32>
    %176 = tpu.matmul %175, %2, %cst_47 {dimension_numbers = #tpu.dot_dimension_numbers<[1], [0], [0], [1], [0, 0, 1, 1], [], []>} : vector<4x32xf32>, vector<32x8xf32>, vector<4x8xf32> -> vector<4x8xf32>
    %cst_48 = arith.constant dense<0xFF800000> : vector<4xf32>
    %177 = vector.multi_reduction <maximumf>, %176, %cst_48 [1] : vector<4x8xf32> to vector<4xf32>
    %178 = vector.shape_cast %177 : vector<4xf32> to vector<4x1xf32>
    %179 = vector.broadcast %178 : vector<4x1xf32> to vector<4x8xf32>
    %180 = arith.subf %176, %179 : vector<4x8xf32>
    %181 = math.exp %180 : vector<4x8xf32>
    %cst_49 = arith.constant dense<0.000000e+00> : vector<4xf32>
    %182 = vector.multi_reduction <add>, %181, %cst_49 [1] : vector<4x8xf32> to vector<4xf32>
    %183 = vector.shape_cast %182 : vector<4xf32> to vector<4x1xf32>
    %184 = tpu.reciprocal %183 {approx = true} : vector<4x1xf32> -> vector<4x1xf32>
    %185 = vector.broadcast %184 : vector<4x1xf32> to vector<4x8xf32>
    %186 = arith.mulf %181, %185 : vector<4x8xf32>
    %cst_50 = arith.constant dense<0.000000e+00> : vector<4x128xf32>
    %187 = tpu.matmul %186, %10, %cst_50 {dimension_numbers = #tpu.dot_dimension_numbers<[1], [0], [0], [1], [0, 0, 1, 1], [], []>} : vector<4x8xf32>, vector<8x128xf32>, vector<4x128xf32> -> vector<4x128xf32>
    %188 = arith.addf %9, %187 : vector<4x128xf32>
    %cst_51 = arith.constant dense<0.000000e+00> : vector<4x128xf32>
    %189 = tpu.matmul %175, %5, %cst_51 {dimension_numbers = #tpu.dot_dimension_numbers<[1], [0], [0], [1], [0, 0, 1, 1], [], []>} : vector<4x32xf32>, vector<32x128xf32>, vector<4x128xf32> -> vector<4x128xf32>
    %190 = arith.addf %188, %189 : vector<4x128xf32>
    %191 = vector.extract_strided_slice %190 {offsets = [0, 0], sizes = [4, 32], strides = [1, 1]} : vector<4x128xf32> to vector<4x32xf32>
    %192 = arith.negf %191 : vector<4x32xf32>
    %193 = math.exp %192 : vector<4x32xf32>
    %cst_52 = arith.constant 1.000000e+00 : f32
    %194 = vector.broadcast %cst_52 : f32 to vector<4x32xf32>
    %195 = arith.addf %194, %193 : vector<4x32xf32>
    %196 = arith.divf %194, %195 : vector<4x32xf32>
    %197 = vector.extract_strided_slice %190 {offsets = [0, 32], sizes = [4, 32], strides = [1, 1]} : vector<4x128xf32> to vector<4x32xf32>
    %198 = arith.negf %197 : vector<4x32xf32>
    %199 = math.exp %198 : vector<4x32xf32>
    %cst_53 = arith.constant 1.000000e+00 : f32
    %200 = vector.broadcast %cst_53 : f32 to vector<4x32xf32>
    %201 = arith.addf %200, %199 : vector<4x32xf32>
    %202 = arith.divf %200, %201 : vector<4x32xf32>
    %203 = vector.extract_strided_slice %190 {offsets = [0, 64], sizes = [4, 32], strides = [1, 1]} : vector<4x128xf32> to vector<4x32xf32>
    %204 = math.tanh %203 : vector<4x32xf32>
    %205 = vector.extract_strided_slice %190 {offsets = [0, 96], sizes = [4, 32], strides = [1, 1]} : vector<4x128xf32> to vector<4x32xf32>
    %206 = arith.negf %205 : vector<4x32xf32>
    %207 = math.exp %206 : vector<4x32xf32>
    %cst_54 = arith.constant 1.000000e+00 : f32
    %208 = vector.broadcast %cst_54 : f32 to vector<4x32xf32>
    %209 = arith.addf %208, %207 : vector<4x32xf32>
    %210 = arith.divf %208, %209 : vector<4x32xf32>
    %211 = arith.mulf %202, %172 : vector<4x32xf32>
    %212 = arith.mulf %196, %204 : vector<4x32xf32>
    %213 = arith.addf %211, %212 : vector<4x32xf32>
    %214 = math.tanh %213 : vector<4x32xf32>
    %215 = arith.mulf %210, %214 : vector<4x32xf32>
    %216 = arith.addf %215, %0 : vector<4x32xf32>
    %cst_55 = arith.constant dense<0.000000e+00> : vector<4x8xf32>
    %217 = tpu.matmul %216, %2, %cst_55 {dimension_numbers = #tpu.dot_dimension_numbers<[1], [0], [0], [1], [0, 0, 1, 1], [], []>} : vector<4x32xf32>, vector<32x8xf32>, vector<4x8xf32> -> vector<4x8xf32>
    %cst_56 = arith.constant dense<0xFF800000> : vector<4xf32>
    %218 = vector.multi_reduction <maximumf>, %217, %cst_56 [1] : vector<4x8xf32> to vector<4xf32>
    %219 = vector.shape_cast %218 : vector<4xf32> to vector<4x1xf32>
    %220 = vector.broadcast %219 : vector<4x1xf32> to vector<4x8xf32>
    %221 = arith.subf %217, %220 : vector<4x8xf32>
    %222 = math.exp %221 : vector<4x8xf32>
    %cst_57 = arith.constant dense<0.000000e+00> : vector<4xf32>
    %223 = vector.multi_reduction <add>, %222, %cst_57 [1] : vector<4x8xf32> to vector<4xf32>
    %224 = vector.shape_cast %223 : vector<4xf32> to vector<4x1xf32>
    %225 = tpu.reciprocal %224 {approx = true} : vector<4x1xf32> -> vector<4x1xf32>
    %226 = vector.broadcast %225 : vector<4x1xf32> to vector<4x8xf32>
    %227 = arith.mulf %222, %226 : vector<4x8xf32>
    %cst_58 = arith.constant dense<0.000000e+00> : vector<4x128xf32>
    %228 = tpu.matmul %227, %10, %cst_58 {dimension_numbers = #tpu.dot_dimension_numbers<[1], [0], [0], [1], [0, 0, 1, 1], [], []>} : vector<4x8xf32>, vector<8x128xf32>, vector<4x128xf32> -> vector<4x128xf32>
    %229 = arith.addf %9, %228 : vector<4x128xf32>
    %cst_59 = arith.constant dense<0.000000e+00> : vector<4x128xf32>
    %230 = tpu.matmul %216, %5, %cst_59 {dimension_numbers = #tpu.dot_dimension_numbers<[1], [0], [0], [1], [0, 0, 1, 1], [], []>} : vector<4x32xf32>, vector<32x128xf32>, vector<4x128xf32> -> vector<4x128xf32>
    %231 = arith.addf %229, %230 : vector<4x128xf32>
    %232 = vector.extract_strided_slice %231 {offsets = [0, 0], sizes = [4, 32], strides = [1, 1]} : vector<4x128xf32> to vector<4x32xf32>
    %233 = arith.negf %232 : vector<4x32xf32>
    %234 = math.exp %233 : vector<4x32xf32>
    %cst_60 = arith.constant 1.000000e+00 : f32
    %235 = vector.broadcast %cst_60 : f32 to vector<4x32xf32>
    %236 = arith.addf %235, %234 : vector<4x32xf32>
    %237 = arith.divf %235, %236 : vector<4x32xf32>
    %238 = vector.extract_strided_slice %231 {offsets = [0, 32], sizes = [4, 32], strides = [1, 1]} : vector<4x128xf32> to vector<4x32xf32>
    %239 = arith.negf %238 : vector<4x32xf32>
    %240 = math.exp %239 : vector<4x32xf32>
    %cst_61 = arith.constant 1.000000e+00 : f32
    %241 = vector.broadcast %cst_61 : f32 to vector<4x32xf32>
    %242 = arith.addf %241, %240 : vector<4x32xf32>
    %243 = arith.divf %241, %242 : vector<4x32xf32>
    %244 = vector.extract_strided_slice %231 {offsets = [0, 64], sizes = [4, 32], strides = [1, 1]} : vector<4x128xf32> to vector<4x32xf32>
    %245 = math.tanh %244 : vector<4x32xf32>
    %246 = vector.extract_strided_slice %231 {offsets = [0, 96], sizes = [4, 32], strides = [1, 1]} : vector<4x128xf32> to vector<4x32xf32>
    %247 = arith.negf %246 : vector<4x32xf32>
    %248 = math.exp %247 : vector<4x32xf32>
    %cst_62 = arith.constant 1.000000e+00 : f32
    %249 = vector.broadcast %cst_62 : f32 to vector<4x32xf32>
    %250 = arith.addf %249, %248 : vector<4x32xf32>
    %251 = arith.divf %249, %250 : vector<4x32xf32>
    %252 = arith.mulf %243, %213 : vector<4x32xf32>
    %253 = arith.mulf %237, %245 : vector<4x32xf32>
    %254 = arith.addf %252, %253 : vector<4x32xf32>
    %255 = math.tanh %254 : vector<4x32xf32>
    %256 = arith.mulf %251, %255 : vector<4x32xf32>
    %257 = arith.addf %256, %0 : vector<4x32xf32>
    %cst_63 = arith.constant dense<0.000000e+00> : vector<4x8xf32>
    %258 = tpu.matmul %257, %2, %cst_63 {dimension_numbers = #tpu.dot_dimension_numbers<[1], [0], [0], [1], [0, 0, 1, 1], [], []>} : vector<4x32xf32>, vector<32x8xf32>, vector<4x8xf32> -> vector<4x8xf32>
    %cst_64 = arith.constant dense<0xFF800000> : vector<4xf32>
    %259 = vector.multi_reduction <maximumf>, %258, %cst_64 [1] : vector<4x8xf32> to vector<4xf32>
    %260 = vector.shape_cast %259 : vector<4xf32> to vector<4x1xf32>
    %261 = vector.broadcast %260 : vector<4x1xf32> to vector<4x8xf32>
    %262 = arith.subf %258, %261 : vector<4x8xf32>
    %263 = math.exp %262 : vector<4x8xf32>
    %cst_65 = arith.constant dense<0.000000e+00> : vector<4xf32>
    %264 = vector.multi_reduction <add>, %263, %cst_65 [1] : vector<4x8xf32> to vector<4xf32>
    %265 = vector.shape_cast %264 : vector<4xf32> to vector<4x1xf32>
    %266 = tpu.reciprocal %265 {approx = true} : vector<4x1xf32> -> vector<4x1xf32>
    %267 = vector.broadcast %266 : vector<4x1xf32> to vector<4x8xf32>
    %268 = arith.mulf %263, %267 : vector<4x8xf32>
    %cst_66 = arith.constant dense<0.000000e+00> : vector<4x128xf32>
    %269 = tpu.matmul %268, %10, %cst_66 {dimension_numbers = #tpu.dot_dimension_numbers<[1], [0], [0], [1], [0, 0, 1, 1], [], []>} : vector<4x8xf32>, vector<8x128xf32>, vector<4x128xf32> -> vector<4x128xf32>
    %270 = arith.addf %9, %269 : vector<4x128xf32>
    %cst_67 = arith.constant dense<0.000000e+00> : vector<4x128xf32>
    %271 = tpu.matmul %257, %5, %cst_67 {dimension_numbers = #tpu.dot_dimension_numbers<[1], [0], [0], [1], [0, 0, 1, 1], [], []>} : vector<4x32xf32>, vector<32x128xf32>, vector<4x128xf32> -> vector<4x128xf32>
    %272 = arith.addf %270, %271 : vector<4x128xf32>
    %273 = vector.extract_strided_slice %272 {offsets = [0, 0], sizes = [4, 32], strides = [1, 1]} : vector<4x128xf32> to vector<4x32xf32>
    %274 = arith.negf %273 : vector<4x32xf32>
    %275 = math.exp %274 : vector<4x32xf32>
    %cst_68 = arith.constant 1.000000e+00 : f32
    %276 = vector.broadcast %cst_68 : f32 to vector<4x32xf32>
    %277 = arith.addf %276, %275 : vector<4x32xf32>
    %278 = arith.divf %276, %277 : vector<4x32xf32>
    %279 = vector.extract_strided_slice %272 {offsets = [0, 32], sizes = [4, 32], strides = [1, 1]} : vector<4x128xf32> to vector<4x32xf32>
    %280 = arith.negf %279 : vector<4x32xf32>
    %281 = math.exp %280 : vector<4x32xf32>
    %cst_69 = arith.constant 1.000000e+00 : f32
    %282 = vector.broadcast %cst_69 : f32 to vector<4x32xf32>
    %283 = arith.addf %282, %281 : vector<4x32xf32>
    %284 = arith.divf %282, %283 : vector<4x32xf32>
    %285 = vector.extract_strided_slice %272 {offsets = [0, 64], sizes = [4, 32], strides = [1, 1]} : vector<4x128xf32> to vector<4x32xf32>
    %286 = math.tanh %285 : vector<4x32xf32>
    %287 = vector.extract_strided_slice %272 {offsets = [0, 96], sizes = [4, 32], strides = [1, 1]} : vector<4x128xf32> to vector<4x32xf32>
    %288 = arith.negf %287 : vector<4x32xf32>
    %289 = math.exp %288 : vector<4x32xf32>
    %cst_70 = arith.constant 1.000000e+00 : f32
    %290 = vector.broadcast %cst_70 : f32 to vector<4x32xf32>
    %291 = arith.addf %290, %289 : vector<4x32xf32>
    %292 = arith.divf %290, %291 : vector<4x32xf32>
    %293 = arith.mulf %284, %254 : vector<4x32xf32>
    %294 = arith.mulf %278, %286 : vector<4x32xf32>
    %295 = arith.addf %293, %294 : vector<4x32xf32>
    %296 = math.tanh %295 : vector<4x32xf32>
    %297 = arith.mulf %292, %296 : vector<4x32xf32>
    %298 = arith.addf %297, %0 : vector<4x32xf32>
    %cst_71 = arith.constant dense<0.000000e+00> : vector<4x8xf32>
    %299 = tpu.matmul %298, %2, %cst_71 {dimension_numbers = #tpu.dot_dimension_numbers<[1], [0], [0], [1], [0, 0, 1, 1], [], []>} : vector<4x32xf32>, vector<32x8xf32>, vector<4x8xf32> -> vector<4x8xf32>
    %cst_72 = arith.constant dense<0xFF800000> : vector<4xf32>
    %300 = vector.multi_reduction <maximumf>, %299, %cst_72 [1] : vector<4x8xf32> to vector<4xf32>
    %301 = vector.shape_cast %300 : vector<4xf32> to vector<4x1xf32>
    %302 = vector.broadcast %301 : vector<4x1xf32> to vector<4x8xf32>
    %303 = arith.subf %299, %302 : vector<4x8xf32>
    %304 = math.exp %303 : vector<4x8xf32>
    %cst_73 = arith.constant dense<0.000000e+00> : vector<4xf32>
    %305 = vector.multi_reduction <add>, %304, %cst_73 [1] : vector<4x8xf32> to vector<4xf32>
    %306 = vector.shape_cast %305 : vector<4xf32> to vector<4x1xf32>
    %307 = tpu.reciprocal %306 {approx = true} : vector<4x1xf32> -> vector<4x1xf32>
    %308 = vector.broadcast %307 : vector<4x1xf32> to vector<4x8xf32>
    %309 = arith.mulf %304, %308 : vector<4x8xf32>
    %cst_74 = arith.constant dense<0.000000e+00> : vector<4x128xf32>
    %310 = tpu.matmul %309, %10, %cst_74 {dimension_numbers = #tpu.dot_dimension_numbers<[1], [0], [0], [1], [0, 0, 1, 1], [], []>} : vector<4x8xf32>, vector<8x128xf32>, vector<4x128xf32> -> vector<4x128xf32>
    %311 = arith.addf %9, %310 : vector<4x128xf32>
    %cst_75 = arith.constant dense<0.000000e+00> : vector<4x128xf32>
    %312 = tpu.matmul %298, %5, %cst_75 {dimension_numbers = #tpu.dot_dimension_numbers<[1], [0], [0], [1], [0, 0, 1, 1], [], []>} : vector<4x32xf32>, vector<32x128xf32>, vector<4x128xf32> -> vector<4x128xf32>
    %313 = arith.addf %311, %312 : vector<4x128xf32>
    %314 = vector.extract_strided_slice %313 {offsets = [0, 0], sizes = [4, 32], strides = [1, 1]} : vector<4x128xf32> to vector<4x32xf32>
    %315 = arith.negf %314 : vector<4x32xf32>
    %316 = math.exp %315 : vector<4x32xf32>
    %cst_76 = arith.constant 1.000000e+00 : f32
    %317 = vector.broadcast %cst_76 : f32 to vector<4x32xf32>
    %318 = arith.addf %317, %316 : vector<4x32xf32>
    %319 = arith.divf %317, %318 : vector<4x32xf32>
    %320 = vector.extract_strided_slice %313 {offsets = [0, 32], sizes = [4, 32], strides = [1, 1]} : vector<4x128xf32> to vector<4x32xf32>
    %321 = arith.negf %320 : vector<4x32xf32>
    %322 = math.exp %321 : vector<4x32xf32>
    %cst_77 = arith.constant 1.000000e+00 : f32
    %323 = vector.broadcast %cst_77 : f32 to vector<4x32xf32>
    %324 = arith.addf %323, %322 : vector<4x32xf32>
    %325 = arith.divf %323, %324 : vector<4x32xf32>
    %326 = vector.extract_strided_slice %313 {offsets = [0, 64], sizes = [4, 32], strides = [1, 1]} : vector<4x128xf32> to vector<4x32xf32>
    %327 = math.tanh %326 : vector<4x32xf32>
    %328 = vector.extract_strided_slice %313 {offsets = [0, 96], sizes = [4, 32], strides = [1, 1]} : vector<4x128xf32> to vector<4x32xf32>
    %329 = arith.negf %328 : vector<4x32xf32>
    %330 = math.exp %329 : vector<4x32xf32>
    %cst_78 = arith.constant 1.000000e+00 : f32
    %331 = vector.broadcast %cst_78 : f32 to vector<4x32xf32>
    %332 = arith.addf %331, %330 : vector<4x32xf32>
    %333 = arith.divf %331, %332 : vector<4x32xf32>
    %334 = arith.mulf %325, %295 : vector<4x32xf32>
    %335 = arith.mulf %319, %327 : vector<4x32xf32>
    %336 = arith.addf %334, %335 : vector<4x32xf32>
    %337 = math.tanh %336 : vector<4x32xf32>
    %338 = arith.mulf %333, %337 : vector<4x32xf32>
    %339 = arith.addf %338, %0 : vector<4x32xf32>
    %c0_79 = arith.constant 0 : index
    %c0_80 = arith.constant 0 : index
    %340 = vector.load %arg7[%c0_79, %c0_80] : memref<4x32xf32, #tpu.memory_space<vmem>>, vector<4x32xf32>
    tpu.vector_store %arg7[%c0_79, %c0_80], %339 {strides = array<i32>} : memref<4x32xf32, #tpu.memory_space<vmem>>, vector<4x32xf32>,
    return
  }
}

</mosaic_0001>

<bundles_post_ra>
// kernel: tpu_custom_call.1
= control target key start
LH: loop header
LB: loop body
LE: loop exit
PB: predicated region body
PF: predicated region fallthrough
CT: control target
= control target key end

     0   :  { %12 = vsyncpa [#allocation3], 0  ;;  %s3352_s0 = inlined_call_operand.vmem [shape: f32[4,32], index: 0, kind: input, shape index: {}]   ;;  %s3353_s1 = inlined_call_operand.vmem [shape: f32[8,32], index: 1, kind: input, shape index: {}]   ;;  %s3354_s2 = inlined_call_operand.vmem [shape: f32[32,8], index: 2, kind: input, shape index: {}]   ;;  %s3355_s3 = inlined_call_operand.vmem [shape: f32[32,128], index: 3, kind: input, shape index: {}]   ;;  %s3356_s4 = inlined_call_operand.hbm [shape: f32[32,128], index: 4, kind: input, shape index: {}]   ;;  %s3357_s5 = inlined_call_operand.hbm [shape: f32[32,128], index: 5, kind: input, shape index: {}]   ;;  %s3358_s6 = inlined_call_operand.vmem [shape: f32[1,128], index: 6, kind: input, shape index: {}]   ;;  %s3359_s7 = inlined_call_operand.hbm [shape: f32[4,32], index: 7, kind: output, shape index: {}]  }
   0x1   :  { %13 = vsyncpa [#allocation6], 0 }
   0x2   :  { %14 = vsyncpa [#allocation4], 0  ;;  %s2986_s24 = smov [#allocation2]   ;;  %s2914_s28 = scalar_lea.hbm %s3356_s4, 512 }
   0x3   :  { %s28_s25 = sshll.u32 %s2986_s24, 4  ;;  %p2915_p0 = scmp.ne.s32.totalorder %s3356_s4, %s2914_s28  ;;  %s29_s25 = int_to_ptr.vmem [resolvable:$true] %s28_s25 }
   0x4   :  { %p2918_p1 = scmp.lt.u32.totalorder %s2914_s28, %s3356_s4 }
   0x6   :  { %p2920_p2 = pnand %p2918_p1, %p2915_p0 }
   0x8   :  { %2923 = shalt.err (!%p2920_p2)
}
   0x9   :  { %s2924_s10 = scalar_lea.vmem %s29_s25, 512  ;;  %p2929_p4 = scmp.lt.s32.totalorder %s29_s25, %s29_s25 }
   0xa   :  { %p2925_p3 = scmp.ne.s32.totalorder %s29_s25, %s2924_s10  ;;  %p2930_p5 = scmp.lt.s32.totalorder %s2924_s10, %s2924_s10 }
   0xc   :  { %p2931_p6 = por %p2930_p5, %p2929_p4 }
   0xe   :  { %p2932_p7 = pnand %p2931_p6, %p2925_p3 }
  0x10   :  { %2935 = shalt.err (!%p2932_p7)
}
  0x11   :  { %s2987_s11 = smov 128   ;;  %s2988_s12 = smov 8  }
  0x12   :  { %34 = dma.hbm_to_vmem [thread:$0]  %s3356_s4, 512, %s29_s25, [#allocation3], %s2987_s11, %s2987_s11, %s2988_s12  }
  0x13   :  { %s2989_s15 = smov [#allocation5]   ;;  %s2936_s19 = scalar_lea.hbm %s3357_s5, 512 }
  0x14   :  { %s40_s16 = sshll.u32 %s2989_s15, 4  ;;  %p2937_p8 = scmp.ne.s32.totalorder %s3357_s5, %s2936_s19  ;;  %s41_s16 = int_to_ptr.vmem [resolvable:$true] %s40_s16 }
  0x15   :  { %p2940_p9 = scmp.lt.u32.totalorder %s2936_s19, %s3357_s5 }
  0x17   :  { %p2942_p10 = pnand %p2940_p9, %p2937_p8 }
  0x19   :  { %2945 = shalt.err (!%p2942_p10)
}
  0x1a   :  { %s2946_s24 = scalar_lea.vmem %s41_s16, 512  ;;  %p2951_p12 = scmp.lt.s32.totalorder %s41_s16, %s41_s16 }
  0x1b   :  { %p2947_p11 = scmp.ne.s32.totalorder %s41_s16, %s2946_s24  ;;  %p2952_p13 = scmp.lt.s32.totalorder %s2946_s24, %s2946_s24 }
  0x1d   :  { %p2953_p0 = por %p2952_p13, %p2951_p12 }
  0x1f   :  { %p2954_p1 = pnand %p2953_p0, %p2947_p11 }
  0x21   :  { %2957 = shalt.err (!%p2954_p1)
}
  0x22   :  { %46 = dma.hbm_to_vmem [thread:$0]  %s3357_s5, 512, %s41_s16, [#allocation6], %s2987_s11, %s2987_s11, %s2988_s12  }
  0x23   :  { %2980 = dma.done.wait [#allocation3], 512  }
  0x24   :  { %2981 = vsyncadd [#allocation3], 4294966784 }
  0x25   :  { %2982 = dma.done.wait [#allocation6], 512  }
  0x26   :  { %2983 = vsyncadd [#allocation6], 4294966784  ;;  %v2990_v0 = vmov 0.0|0.0   ;;  %vm2991_vm0 = vmmov 0   ;;  %v2992_v1 = vmov 0.0   ;;  %v61_v2 = vld [vmem:[%s3355_s3] sm:$0xff] }
  0x27   :  { %2676 = vmatprep.subr.bf16.mxu0 %v2990_v0  ;;  %2446 = vmatprep.mubr.msk.f32.mxu0 %vm2991_vm0, %v2992_v1  ;;  %v62_v3 = vld [vmem:[%s3355_s3 + $0x8] sm:$0xff]  ;;  %v63_v4 = vld [vmem:[%s3355_s3 + $0x10] sm:$0xff]  ;;  %v64_v6 = vld [vmem:[%s3355_s3 + $0x18] sm:$0xff]  ;;  %vm80_vm1 = vcmask 261120   ;;  %vm297_vm2 = vcmask 60416   ;;  %vm309_vm3 = vcmask 64512  }
  0x28   :  { %2682 = vmatprep.subr.bf16.mxu1 %v2990_v0  ;;  %2457 = vmatprep.mubr.msk.f32.mxu1 %vm2991_vm0, %v2992_v1  ;;  %v2677_v5 = vpack.c.bf16 %v62_v3, %v61_v2  ;;  %v2680_v7 = vpack.c.bf16 %v64_v6, %v63_v4  ;;  %v57_v8 = vld [vmem:[%s3354_s2] sm:$0xff]  ;;  %v58_v9 = vld [vmem:[%s3354_s2 + $0x8] sm:$0xff]  ;;  %v59_v12 = vld [vmem:[%s3354_s2 + $0x10] sm:$0xff]  ;;  %s2993_s20 = smov 64   ;;  %s2995_s21 = smov 96   ;;  %vm2279_vm4 = vcmask 257024  }
  0x29   :  { %v3089_v10 = vld [vmem:[%s3352_s0] sm:$0xf]  ;;  %v3091_v11 = vpack.c.bf16 %v58_v9, %v57_v8  ;;  %v60_v13 = vld [vmem:[%s3354_s2 + $0x18] sm:$0xff]  ;;  %v66_v16 = vld [vmem:[#allocation2 + $0x8] sm:$0xff]  ;;  %s2996_s22 = smov [#allocation7]  }
  0x2a   :  { %2678 = vmatpush3.bf16.msra.mxu0 %v2677_v5  ;;  %v3103_v14 = vpack.c.bf16 %v60_v13, %v59_v12  ;;  %v65_v15 = vld [vmem:[#allocation2] sm:$0xff]  ;;  %v67_v17 = vld [vmem:[#allocation2 + $0x10] sm:$0xff]  ;;  %v68_v19 = vld [vmem:[#allocation2 + $0x18] sm:$0xff]  ;;  %s2287_s23 = sshll.u32 %s2996_s22, 4  ;;  %s2288_s23 = int_to_ptr.vmem [resolvable:$true] %s2287_s23 }
  0x2b   :  { %2679 = vmatprep.subr.bf16.mxu0 %v2990_v0  ;;  %v2683_v18 = vpack.c.bf16 %v66_v16, %v65_v15  ;;  %v2686_v20 = vpack.c.bf16 %v68_v19, %v67_v17  ;;  %v56_v21 = vld [vmem:[%s3353_s1] sm:$0xff]  ;;  %v70_v33 = vld [vmem:[#allocation5 + $0x8] sm:$0xff]  ;;  %v71_v35 = vld [vmem:[#allocation5 + $0x10] sm:$0xff]  ;;  %s2958_s24 = scalar_lea.vmem %s2288_s23, 64  ;;  %p2963_p3 = scmp.lt.s32.totalorder %s2288_s23, %s2288_s23 }
  0x2c   :  { %v69_v32 = vld [vmem:[#allocation5] sm:$0xff]  ;;  %v72_v36 = vld [vmem:[#allocation5 + $0x18] sm:$0xff]  ;;  %p2959_p2 = scmp.ne.s32.totalorder %s2288_s23, %s2958_s24  ;;  %p2964_p4 = scmp.lt.s32.totalorder %s2958_s24, %s2958_s24 }
  0x2d   :  { %2684 = vmatpush3.bf16.msra.mxu1 %v2683_v18  ;;  %v3124_v34 = vpack.c.bf16 %v70_v33, %v69_v32  ;;  %v3128_v37 = vpack.c.bf16 %v72_v36, %v71_v35  ;;  %v2297_v45 = vld [vmem:[%s3358_s6] ss:$0 sm:$0xff]  ;;  %s2994_s6 = smov 32  }
  0x2e   :  { %2681 = vmatpush3.bf16.msra.mxu0 %v2680_v7  ;;  %2685 = vmatprep.subr.bf16.mxu1 %v2990_v0  ;;  %p2965_p5 = por %p2964_p4, %p2963_p3 }
  0x2f   :  { %2688 = vmatprep.subr.bf16.mxu0 %v2990_v0 }
  0x30   :  { %p2966_p6 = pnand %p2965_p5, %p2959_p2 }
  0x31   :  { %2447 = vmatmul.mubr.msk.f32.vlgmr.msra.gmra.mrb[0].mxu0 %vm80_vm1, %v3089_v10  ;;  %2687 = vmatpush3.bf16.msra.mxu1 %v2686_v20 }
  0x32   :  { %2690 = vmatpush3.bf16.msra.mxu0 %v3091_v11  ;;  %2468 = vmatprep.mubr.msk.f32.mxu0 %vm2991_vm0, %v2992_v1 }
  0x33   :  { %2691 = vmatprep.subr.bf16.mxu0 %v2990_v0  ;;  %2694 = vmatprep.subr.bf16.mxu1 %v2990_v0 }
  0x34   :  { %2458 = vmatmul.mubr.msk.f32.vlgmr.msra.gmra.mrb[0].mxu1 %vm80_vm1, %v56_v21 }
  0x35   :  { %2484 = vmatprep.mubr.msk.f32.mxu1 %vm2991_vm0, %v2992_v1  ;;  %2696 = vmatpush3.bf16.msra.mxu1 %v3124_v34 }
  0x36   :  { %2693 = vmatpush3.bf16.msra.mxu0 %v3103_v14  ;;  %2697 = vmatprep.subr.bf16.mxu1 %v2990_v0 }
  0x37   :  { %2471 = vmatprep.subr.mxu0 %v2992_v1 }
  0x39   :  { %2469 = vmatmul.mubr.msk.f32.vlgmr.msra.gmra.mrb[2].mxu0 %vm80_vm1, %v3089_v10  ;;  %2699 = vmatpush3.bf16.msra.mxu1 %v3128_v37 }
  0x3a   :  { %2473 = vmatprep.mubr.msk.f32.mxu0 %vm2991_vm0, %v2992_v1  ;;  %2498 = vmatprep.subr.mxu1 %v2992_v1 }
  0x3c   :  { %2485 = vmatmul.mubr.msk.f32.vlgmr.msra.gmra.mrb[2].mxu1 %vm80_vm1, %v3089_v10 }
  0x3d   :  { %2500 = vmatprep.mubr.msk.f32.mxu1 %vm2991_vm0, %v2992_v1 }
 0x104   :  { %v150_v22 = vpop.f32.mrb[0].mxu0 }
 0x105   :  { %v2448_v23 = vpop.f32.mrb[1].mxu0  ;;  %v3152_v46 = vadd.f32 %v2297_v45, %v150_v22 }
 0x107   :  { %v3132_v38 = vpop.f32.mrb[0].mxu1 }
 0x108   :  { %v2459_v39 = vpop.f32.mrb[1].mxu1  ;;  %2472 = vmatpush3.msra.mxu0 %v3132_v38  ;;  %2499 = vmatpush3.msra.mxu1 %v3132_v38 }
 0x109   :  { %2700 = vmatprep.subr.bf16.mxu0 %v2990_v0  ;;  %2706 = vmatprep.subr.bf16.mxu1 %v2990_v0 }
 0x10c   :  { %v293_v24 = vpop.f32.mrb[2].mxu0 }
 0x10d   :  { %v2470_v25 = vpop.f32.mrb[3].mxu0  ;;  %v298_v26 = vsel %vm297_vm2, %v293_v24, -inf }
 0x10e   :  { %299 = vmax.xlane.f32.xlu0 %v298_v26 }
 0x10f   :  { %v450_v43 = vpop.f32.mrb[2].mxu1 }
 0x110   :  { %v2486_v44 = vpop.f32.mrb[3].mxu1 }
 0x19b   :  { %v300_v27 = vpop.xlane.xlu0 %299 }
 0x19c   :  { %v301_v28 = vsub.f32 %v293_v24, %v300_v27 }
 0x19e   :  { %v302_v29 = vmul.f32 1.442695, %v301_v28 }
 0x1a0   :  { %2818 = vpow2.f32 %v302_v29 }
 0x1aa   :  { %v2819_v30 = vpop.eup %2818 }
 0x1ab   :  { %v304_v31 = vsel %vm297_vm2, %v2819_v30, 0.0 }
 0x1ac   :  { %305 = vadd.xlane.f32.xlu0 %v304_v31 }
 0x239   :  { %v306_v40 = vpop.xlane.xlu0 %305 }
 0x23a   :  { %2820 = vrcp.f32 %v306_v40 }
 0x244   :  { %v2821_v41 = vpop.eup %2820 }
 0x245   :  { %v308_v42 = vmul.f32 %v2821_v41, %v2819_v30 }
 0x247   :  { %2474 = vmatmul.mubr.msk.f32.vlgmr.msra.gmra.mrb[4].mxu0 %vm309_vm3, %v308_v42 }
 0x248   :  { %2702 = vmatpush3.bf16.msra.mxu0 %v3091_v11  ;;  %2495 = vmatprep.mubr.msk.f32.mxu0 %vm2991_vm0, %v2992_v1 }
 0x249   :  { %2703 = vmatprep.subr.bf16.mxu0 %v2990_v0 }
 0x24c   :  { %2705 = vmatpush3.bf16.msra.mxu0 %v3103_v14 }
 0x24d   :  { %2712 = vmatprep.subr.bf16.mxu0 %v2990_v0 }
 0x31a   :  { %v379_v47 = vpop.f32.mrb[4].mxu0 }
 0x31b   :  { %v383_v48 = vadd.f32 %v379_v47, %v3152_v46  ;;  %v2475_v49 = vpop.f32.mrb[5].mxu0 }
 0x31d   :  { %v454_v50 = vadd.f32 %v450_v43, %v383_v48 }
 0x31f   :  { %2822 = vtanh.f32 %v454_v50  ;;  %v2303_v52 = vmul.f32 -1.442695, %v454_v50 }
 0x321   :  { %2824 = vpow2.f32 %v2303_v52 }
 0x329   :  { %v2823_v51 = vpop.eup %2822 }
 0x32a   :  { %464 = vrot.lane.b32.xlu1 %v2823_v51, %s2993_s20 }
 0x32b   :  { %v2825_v53 = vpop.eup %2824 }
 0x32c   :  { %v458_v54 = vadd.f32 1.0, %v2825_v53 }
 0x32e   :  { %2826 = vrcp.f32 %v458_v54 }
 0x338   :  { %v2827_v55 = vpop.eup %2826 }
 0x339   :  { %v462_v58 = vmul.f32 0.0, %v2827_v55 }
 0x39c   :  { %v465_v56 = vpop.permute.xlu1 %464 }
 0x39d   :  { %v467_v57 = vmul.f32 %v2827_v55, %v465_v56 }
 0x39f   :  { %469 = vrot.lane.b32.xlu1 %v467_v57, %s2994_s6 }
 0x3a3   :  { %479 = vrot.lane.b32.xlu1 %v3089_v10, %s2995_s21 }
 0x411   :  { %v470_v59 = vpop.permute.xlu1 %469 }
 0x412   :  { %v472_v60 = vadd.f32 %v470_v59, %v462_v58 }
 0x414   :  { %2828 = vtanh.f32 %v472_v60 }
 0x415   :  { %v3159_v63 = vpop.permute.xlu1 %479 }
 0x41e   :  { %v2829_v61 = vpop.eup %2828 }
 0x41f   :  { %475 = vrot.lane.b32.xlu0 %v2829_v61, %s2993_s20 }
 0x491   :  { %v476_v62 = vpop.permute.xlu0 %475 }
 0x492   :  { %v478_v2 = vmul.f32 %v2827_v55, %v476_v62 }
 0x494   :  { %v482_v3 = vadd.f32 %v3159_v63, %v478_v2 }
 0x496   :  { %484 = vrot.lane.b32.xlu1 %v482_v3, %s2994_s6 }
 0x508   :  { %v485_v4 = vpop.permute.xlu1 %484 }
 0x509   :  { %2496 = vmatmul.mubr.msk.f32.vlgmr.msra.gmra.mrb[6].mxu0 %vm80_vm1, %v485_v4 }
 0x50a   :  { %2714 = vmatpush3.bf16.msra.mxu0 %v3091_v11  ;;  %2522 = vmatprep.mubr.msk.f32.mxu0 %vm2991_vm0, %v2992_v1 }
 0x50b   :  { %2715 = vmatprep.subr.bf16.mxu0 %v2990_v0 }
 0x50e   :  { %2717 = vmatpush3.bf16.msra.mxu0 %v3103_v14 }
 0x50f   :  { %2525 = vmatprep.subr.mxu0 %v2992_v1 }
 0x5dc   :  { %v554_v5 = vpop.f32.mrb[6].mxu0 }
 0x5dd   :  { %v2497_v6 = vpop.f32.mrb[7].mxu0  ;;  %v558_v7 = vsel %vm297_vm2, %v554_v5, -inf }
 0x5de   :  { %559 = vmax.xlane.f32.xlu1 %v558_v7 }
 0x66b   :  { %v560_v8 = vpop.xlane.xlu1 %559 }
 0x66c   :  { %v561_v9 = vsub.f32 %v554_v5, %v560_v8 }
 0x66e   :  { %v562_v10 = vmul.f32 1.442695, %v561_v9 }
 0x670   :  { %2830 = vpow2.f32 %v562_v10 }
 0x67a   :  { %v2831_v12 = vpop.eup %2830 }
 0x67b   :  { %v564_v13 = vsel %vm297_vm2, %v2831_v12, 0.0 }
 0x67c   :  { %565 = vadd.xlane.f32.xlu0 %v564_v13 }
 0x709   :  { %v566_v15 = vpop.xlane.xlu0 %565 }
 0x70a   :  { %2832 = vrcp.f32 %v566_v15 }
 0x714   :  { %v2833_v16 = vpop.eup %2832 }
 0x715   :  { %v568_v17 = vmul.f32 %v2833_v16, %v2831_v12 }
 0x717   :  { %2501 = vmatmul.mubr.msk.f32.vlgmr.msra.gmra.mrb[4].mxu1 %vm309_vm3, %v568_v17 }
 0x718   :  { %2708 = vmatpush3.bf16.msra.mxu1 %v3124_v34  ;;  %2511 = vmatprep.mubr.msk.f32.mxu1 %vm2991_vm0, %v2992_v1 }
 0x719   :  { %2709 = vmatprep.subr.bf16.mxu1 %v2990_v0 }
 0x71c   :  { %2711 = vmatpush3.bf16.msra.mxu1 %v3128_v37 }
 0x71d   :  { %2724 = vmatprep.subr.bf16.mxu1 %v2990_v0 }
 0x71f   :  { %2512 = vmatmul.mubr.msk.f32.vlgmr.msra.gmra.mrb[4].mxu1 %vm80_vm1, %v485_v4 }
 0x720   :  { %2726 = vmatpush3.bf16.msra.mxu1 %v3091_v11  ;;  %2549 = vmatprep.mubr.msk.f32.mxu1 %vm2991_vm0, %v2992_v1 }
 0x721   :  { %2727 = vmatprep.subr.bf16.mxu1 %v2990_v0 }
 0x724   :  { %2729 = vmatpush3.bf16.msra.mxu1 %v3103_v14 }
 0x725   :  { %2552 = vmatprep.subr.mxu1 %v2992_v1 }
 0x7f2   :  { %v709_v18 = vpop.f32.mrb[4].mxu1 }
 0x7f3   :  { %v2786_v19 = vadd.f32 %v709_v18, %v3152_v46  ;;  %v2513_v20 = vpop.f32.mrb[5].mxu1 }
 0x7f5   :  { %2834 = vtanh.f32 %v2786_v19  ;;  %v2307_v22 = vmul.f32 -1.442695, %v2786_v19 }
 0x7f7   :  { %2836 = vpow2.f32 %v2307_v22 }
 0x7ff   :  { %v2835_v21 = vpop.eup %2834 }
 0x800   :  { %723 = vrot.lane.b32.xlu1 %v2835_v21, %s2993_s20 }
 0x801   :  { %v2837_v23 = vpop.eup %2836 }
 0x802   :  { %v717_v24 = vadd.f32 1.0, %v2837_v23 }
 0x804   :  { %2838 = vrcp.f32 %v717_v24 }
 0x80e   :  { %v2839_v25 = vpop.eup %2838 }
 0x80f   :  { %v721_v28 = vmul.f32 %v2839_v25, %v472_v60 }
 0x872   :  { %v724_v26 = vpop.permute.xlu1 %723 }
 0x873   :  { %v726_v27 = vmul.f32 %v2839_v25, %v724_v26 }
 0x875   :  { %728 = vrot.lane.b32.xlu0 %v726_v27, %s2994_s6 }
 0x8e7   :  { %v729_v29 = vpop.permute.xlu0 %728 }
 0x8e8   :  { %v731_v30 = vadd.f32 %v729_v29, %v721_v28 }
 0x8ea   :  { %2840 = vtanh.f32 %v731_v30 }
 0x8f4   :  { %v2841_v31 = vpop.eup %2840 }
 0x8f5   :  { %734 = vrot.lane.b32.xlu1 %v2841_v31, %s2993_s20 }
 0x967   :  { %v735_v32 = vpop.permute.xlu1 %734 }
 0x968   :  { %v737_v33 = vmul.f32 %v2839_v25, %v735_v32 }
 0x96a   :  { %v738_v35 = vadd.f32 %v737_v33, %v3159_v63 }
 0x96c   :  { %740 = vrot.lane.b32.xlu1 %v738_v35, %s2994_s6 }
 0x9de   :  { %v741_v36 = vpop.permute.xlu1 %740 }
 0x9df   :  { %2523 = vmatmul.mubr.msk.f32.vlgmr.msra.gmra.mrb[8].mxu0 %vm80_vm1, %v741_v36 }
 0x9e0   :  { %2526 = vmatpush3.msra.mxu0 %v3132_v38  ;;  %2527 = vmatprep.mubr.msk.f32.mxu0 %vm2991_vm0, %v2992_v1 }
 0x9e1   :  { %2718 = vmatprep.subr.bf16.mxu0 %v2990_v0 }
 0xab2   :  { %v810_v39 = vpop.f32.mrb[8].mxu0 }
 0xab3   :  { %v2524_v40 = vpop.f32.mrb[9].mxu0  ;;  %v814_v41 = vsel %vm297_vm2, %v810_v39, -inf }
 0xab4   :  { %815 = vmax.xlane.f32.xlu1 %v814_v41 }
 0xb41   :  { %v816_v42 = vpop.xlane.xlu1 %815 }
 0xb42   :  { %v817_v43 = vsub.f32 %v810_v39, %v816_v42 }
 0xb44   :  { %v818_v44 = vmul.f32 1.442695, %v817_v43 }
 0xb46   :  { %2842 = vpow2.f32 %v818_v44 }
 0xb50   :  { %v2843_v45 = vpop.eup %2842 }
 0xb51   :  { %v820_v47 = vsel %vm297_vm2, %v2843_v45, 0.0 }
 0xb52   :  { %821 = vadd.xlane.f32.xlu0 %v820_v47 }
 0xbdf   :  { %v822_v48 = vpop.xlane.xlu0 %821 }
 0xbe0   :  { %2844 = vrcp.f32 %v822_v48 }
 0xbea   :  { %v2845_v49 = vpop.eup %2844 }
 0xbeb   :  { %v824_v50 = vmul.f32 %v2845_v49, %v2843_v45 }
 0xbed   :  { %2528 = vmatmul.mubr.msk.f32.vlgmr.msra.gmra.mrb[10].mxu0 %vm309_vm3, %v824_v50 }
 0xbee   :  { %2720 = vmatpush3.bf16.msra.mxu0 %v3124_v34  ;;  %2538 = vmatprep.mubr.msk.f32.mxu0 %vm2991_vm0, %v2992_v1 }
 0xbef   :  { %2721 = vmatprep.subr.bf16.mxu0 %v2990_v0 }
 0xbf2   :  { %2723 = vmatpush3.bf16.msra.mxu0 %v3128_v37 }
 0xbf3   :  { %2736 = vmatprep.subr.bf16.mxu0 %v2990_v0 }
 0xbf5   :  { %2539 = vmatmul.mubr.msk.f32.vlgmr.msra.gmra.mrb[10].mxu0 %vm80_vm1, %v741_v36 }
 0xbf6   :  { %2738 = vmatpush3.bf16.msra.mxu0 %v3091_v11  ;;  %2576 = vmatprep.mubr.msk.f32.mxu0 %vm2991_vm0, %v2992_v1 }
 0xbf7   :  { %2739 = vmatprep.subr.bf16.mxu0 %v2990_v0 }
 0xbfa   :  { %2741 = vmatpush3.bf16.msra.mxu0 %v3103_v14 }
 0xbfb   :  { %2579 = vmatprep.subr.mxu0 %v2992_v1 }
 0xcc8   :  { %v965_v51 = vpop.f32.mrb[10].mxu0 }
 0xcc9   :  { %v2787_v52 = vadd.f32 %v965_v51, %v3152_v46  ;;  %v2540_v53 = vpop.f32.mrb[11].mxu0 }
 0xccb   :  { %2846 = vtanh.f32 %v2787_v52  ;;  %v2311_v55 = vmul.f32 -1.442695, %v2787_v52 }
 0xccd   :  { %2848 = vpow2.f32 %v2311_v55 }
 0xcd5   :  { %v2847_v54 = vpop.eup %2846 }
 0xcd6   :  { %979 = vrot.lane.b32.xlu1 %v2847_v54, %s2993_s20 }
 0xcd7   :  { %v2849_v56 = vpop.eup %2848 }
 0xcd8   :  { %v973_v57 = vadd.f32 1.0, %v2849_v56 }
 0xcda   :  { %2850 = vrcp.f32 %v973_v57 }
 0xce4   :  { %v2851_v58 = vpop.eup %2850 }
 0xce5   :  { %v977_v61 = vmul.f32 %v2851_v58, %v731_v30 }
 0xd48   :  { %v980_v59 = vpop.permute.xlu1 %979 }
 0xd49   :  { %v982_v60 = vmul.f32 %v2851_v58, %v980_v59 }
 0xd4b   :  { %984 = vrot.lane.b32.xlu0 %v982_v60, %s2994_s6 }
 0xdbd   :  { %v985_v62 = vpop.permute.xlu0 %984 }
 0xdbe   :  { %v987_v2 = vadd.f32 %v985_v62, %v977_v61 }
 0xdc0   :  { %2852 = vtanh.f32 %v987_v2 }
 0xdca   :  { %v2853_v3 = vpop.eup %2852 }
 0xdcb   :  { %990 = vrot.lane.b32.xlu1 %v2853_v3, %s2993_s20 }
 0xe3d   :  { %v991_v4 = vpop.permute.xlu1 %990 }
 0xe3e   :  { %v993_v5 = vmul.f32 %v2851_v58, %v991_v4 }
 0xe40   :  { %v994_v6 = vadd.f32 %v993_v5, %v3159_v63 }
 0xe42   :  { %996 = vrot.lane.b32.xlu1 %v994_v6, %s2994_s6 }
 0xeb4   :  { %v997_v7 = vpop.permute.xlu1 %996 }
 0xeb5   :  { %2550 = vmatmul.mubr.msk.f32.vlgmr.msra.gmra.mrb[6].mxu1 %vm80_vm1, %v997_v7 }
 0xeb6   :  { %2553 = vmatpush3.msra.mxu1 %v3132_v38  ;;  %2554 = vmatprep.mubr.msk.f32.mxu1 %vm2991_vm0, %v2992_v1 }
 0xeb7   :  { %2730 = vmatprep.subr.bf16.mxu1 %v2990_v0 }
 0xf88   :  { %v1066_v8 = vpop.f32.mrb[6].mxu1 }
 0xf89   :  { %v2551_v9 = vpop.f32.mrb[7].mxu1  ;;  %v1070_v10 = vsel %vm297_vm2, %v1066_v8, -inf }
 0xf8a   :  { %1071 = vmax.xlane.f32.xlu0 %v1070_v10 }
0x1017   :  { %v1072_v12 = vpop.xlane.xlu0 %1071 }
0x1018   :  { %v1073_v13 = vsub.f32 %v1066_v8, %v1072_v12 }
0x101a   :  { %v1074_v15 = vmul.f32 1.442695, %v1073_v13 }
0x101c   :  { %2854 = vpow2.f32 %v1074_v15 }
0x1026   :  { %v2855_v16 = vpop.eup %2854 }
0x1027   :  { %v1076_v17 = vsel %vm297_vm2, %v2855_v16, 0.0 }
0x1028   :  { %1077 = vadd.xlane.f32.xlu1 %v1076_v17 }
0x10b5   :  { %v1078_v18 = vpop.xlane.xlu1 %1077 }
0x10b6   :  { %2856 = vrcp.f32 %v1078_v18 }
0x10c0   :  { %v2857_v19 = vpop.eup %2856 }
0x10c1   :  { %v1080_v20 = vmul.f32 %v2857_v19, %v2855_v16 }
0x10c3   :  { %2555 = vmatmul.mubr.msk.f32.vlgmr.msra.gmra.mrb[8].mxu1 %vm309_vm3, %v1080_v20 }
0x10c4   :  { %2732 = vmatpush3.bf16.msra.mxu1 %v3124_v34  ;;  %2565 = vmatprep.mubr.msk.f32.mxu1 %vm2991_vm0, %v2992_v1 }
0x10c5   :  { %2733 = vmatprep.subr.bf16.mxu1 %v2990_v0 }
0x10c8   :  { %2735 = vmatpush3.bf16.msra.mxu1 %v3128_v37 }
0x10c9   :  { %2748 = vmatprep.subr.bf16.mxu1 %v2990_v0 }
0x10cb   :  { %2566 = vmatmul.mubr.msk.f32.vlgmr.msra.gmra.mrb[8].mxu1 %vm80_vm1, %v997_v7 }
0x10cc   :  { %2750 = vmatpush3.bf16.msra.mxu1 %v3091_v11  ;;  %2603 = vmatprep.mubr.msk.f32.mxu1 %vm2991_vm0, %v2992_v1 }
0x10cd   :  { %2751 = vmatprep.subr.bf16.mxu1 %v2990_v0 }
0x10d0   :  { %2753 = vmatpush3.bf16.msra.mxu1 %v3103_v14 }
0x10d1   :  { %2606 = vmatprep.subr.mxu1 %v2992_v1 }
0x119e   :  { %v1221_v21 = vpop.f32.mrb[8].mxu1 }
0x119f   :  { %v2788_v22 = vadd.f32 %v1221_v21, %v3152_v46  ;;  %v2567_v23 = vpop.f32.mrb[9].mxu1 }
0x11a1   :  { %2858 = vtanh.f32 %v2788_v22  ;;  %v2315_v25 = vmul.f32 -1.442695, %v2788_v22 }
0x11a3   :  { %2860 = vpow2.f32 %v2315_v25 }
0x11ab   :  { %v2859_v24 = vpop.eup %2858 }
0x11ac   :  { %1235 = vrot.lane.b32.xlu0 %v2859_v24, %s2993_s20 }
0x11ad   :  { %v2861_v26 = vpop.eup %2860 }
0x11ae   :  { %v1229_v27 = vadd.f32 1.0, %v2861_v26 }
0x11b0   :  { %2862 = vrcp.f32 %v1229_v27 }
0x11ba   :  { %v2863_v28 = vpop.eup %2862 }
0x11bb   :  { %v1233_v31 = vmul.f32 %v2863_v28, %v987_v2 }
0x121e   :  { %v1236_v29 = vpop.permute.xlu0 %1235 }
0x121f   :  { %v1238_v30 = vmul.f32 %v2863_v28, %v1236_v29 }
0x1221   :  { %1240 = vrot.lane.b32.xlu1 %v1238_v30, %s2994_s6 }
0x1293   :  { %v1241_v32 = vpop.permute.xlu1 %1240 }
0x1294   :  { %v1243_v33 = vadd.f32 %v1241_v32, %v1233_v31 }
0x1296   :  { %2864 = vtanh.f32 %v1243_v33 }
0x12a0   :  { %v2865_v35 = vpop.eup %2864 }
0x12a1   :  { %1246 = vrot.lane.b32.xlu0 %v2865_v35, %s2993_s20 }
0x1313   :  { %v1247_v36 = vpop.permute.xlu0 %1246 }
0x1314   :  { %v1249_v39 = vmul.f32 %v2863_v28, %v1247_v36 }
0x1316   :  { %v1250_v40 = vadd.f32 %v1249_v39, %v3159_v63 }
0x1318   :  { %1252 = vrot.lane.b32.xlu1 %v1250_v40, %s2994_s6 }
0x138a   :  { %v1253_v41 = vpop.permute.xlu1 %1252 }
0x138b   :  { %2577 = vmatmul.mubr.msk.f32.vlgmr.msra.gmra.mrb[12].mxu0 %vm80_vm1, %v1253_v41 }
0x138c   :  { %2580 = vmatpush3.msra.mxu0 %v3132_v38  ;;  %2581 = vmatprep.mubr.msk.f32.mxu0 %vm2991_vm0, %v2992_v1 }
0x138d   :  { %2742 = vmatprep.subr.bf16.mxu0 %v2990_v0 }
0x145e   :  { %v1322_v42 = vpop.f32.mrb[12].mxu0 }
0x145f   :  { %v2578_v43 = vpop.f32.mrb[13].mxu0  ;;  %v1326_v44 = vsel %vm297_vm2, %v1322_v42, -inf }
0x1460   :  { %1327 = vmax.xlane.f32.xlu0 %v1326_v44 }
0x14ed   :  { %v1328_v45 = vpop.xlane.xlu0 %1327 }
0x14ee   :  { %v1329_v47 = vsub.f32 %v1322_v42, %v1328_v45 }
0x14f0   :  { %v1330_v48 = vmul.f32 1.442695, %v1329_v47 }
0x14f2   :  { %2866 = vpow2.f32 %v1330_v48 }
0x14fc   :  { %v2867_v49 = vpop.eup %2866 }
0x14fd   :  { %v1332_v50 = vsel %vm297_vm2, %v2867_v49, 0.0 }
0x14fe   :  { %1333 = vadd.xlane.f32.xlu1 %v1332_v50 }
0x158b   :  { %v1334_v51 = vpop.xlane.xlu1 %1333 }
0x158c   :  { %2868 = vrcp.f32 %v1334_v51 }
0x1596   :  { %v2869_v52 = vpop.eup %2868 }
0x1597   :  { %v1336_v53 = vmul.f32 %v2869_v52, %v2867_v49 }
0x1599   :  { %2582 = vmatmul.mubr.msk.f32.vlgmr.msra.gmra.mrb[14].mxu0 %vm309_vm3, %v1336_v53 }
0x159a   :  { %2744 = vmatpush3.bf16.msra.mxu0 %v3124_v34  ;;  %2592 = vmatprep.mubr.msk.f32.mxu0 %vm2991_vm0, %v2992_v1 }
0x159b   :  { %2745 = vmatprep.subr.bf16.mxu0 %v2990_v0 }
0x159e   :  { %2747 = vmatpush3.bf16.msra.mxu0 %v3128_v37 }
0x159f   :  { %2760 = vmatprep.subr.bf16.mxu0 %v2990_v0 }
0x15a1   :  { %2593 = vmatmul.mubr.msk.f32.vlgmr.msra.gmra.mrb[14].mxu0 %vm80_vm1, %v1253_v41 }
0x15a2   :  { %2762 = vmatpush3.bf16.msra.mxu0 %v3091_v11  ;;  %2630 = vmatprep.mubr.msk.f32.mxu0 %vm2991_vm0, %v2992_v1 }
0x15a3   :  { %2763 = vmatprep.subr.bf16.mxu0 %v2990_v0 }
0x15a6   :  { %2765 = vmatpush3.bf16.msra.mxu0 %v3103_v14 }
0x15a7   :  { %2633 = vmatprep.subr.mxu0 %v2992_v1 }
0x1674   :  { %v1477_v54 = vpop.f32.mrb[14].mxu0 }
0x1675   :  { %v2789_v55 = vadd.f32 %v1477_v54, %v3152_v46  ;;  %v2594_v56 = vpop.f32.mrb[15].mxu0 }
0x1677   :  { %2870 = vtanh.f32 %v2789_v55  ;;  %v2319_v58 = vmul.f32 -1.442695, %v2789_v55 }
0x1679   :  { %2872 = vpow2.f32 %v2319_v58 }
0x1681   :  { %v2871_v57 = vpop.eup %2870 }
0x1682   :  { %1491 = vrot.lane.b32.xlu0 %v2871_v57, %s2993_s20 }
0x1683   :  { %v2873_v59 = vpop.eup %2872 }
0x1684   :  { %v1485_v60 = vadd.f32 1.0, %v2873_v59 }
0x1686   :  { %2874 = vrcp.f32 %v1485_v60 }
0x1690   :  { %v2875_v61 = vpop.eup %2874 }
0x1691   :  { %v1489_v3 = vmul.f32 %v2875_v61, %v1243_v33 }
0x16f4   :  { %v1492_v62 = vpop.permute.xlu0 %1491 }
0x16f5   :  { %v1494_v2 = vmul.f32 %v2875_v61, %v1492_v62 }
0x16f7   :  { %1496 = vrot.lane.b32.xlu1 %v1494_v2, %s2994_s6 }
0x1769   :  { %v1497_v4 = vpop.permute.xlu1 %1496 }
0x176a   :  { %v1499_v5 = vadd.f32 %v1497_v4, %v1489_v3 }
0x176c   :  { %2876 = vtanh.f32 %v1499_v5 }
0x1776   :  { %v2877_v6 = vpop.eup %2876 }
0x1777   :  { %1502 = vrot.lane.b32.xlu0 %v2877_v6, %s2993_s20 }
0x17e9   :  { %v1503_v7 = vpop.permute.xlu0 %1502 }
0x17ea   :  { %v1505_v8 = vmul.f32 %v2875_v61, %v1503_v7 }
0x17ec   :  { %v1506_v9 = vadd.f32 %v1505_v8, %v3159_v63 }
0x17ee   :  { %1508 = vrot.lane.b32.xlu1 %v1506_v9, %s2994_s6 }
0x1860   :  { %v1509_v10 = vpop.permute.xlu1 %1508 }
0x1861   :  { %2604 = vmatmul.mubr.msk.f32.vlgmr.msra.gmra.mrb[10].mxu1 %vm80_vm1, %v1509_v10 }
0x1862   :  { %2607 = vmatpush3.msra.mxu1 %v3132_v38  ;;  %2608 = vmatprep.mubr.msk.f32.mxu1 %vm2991_vm0, %v2992_v1 }
0x1863   :  { %2754 = vmatprep.subr.bf16.mxu1 %v2990_v0 }
0x1934   :  { %v1578_v12 = vpop.f32.mrb[10].mxu1 }
0x1935   :  { %v2605_v13 = vpop.f32.mrb[11].mxu1  ;;  %v1582_v15 = vsel %vm297_vm2, %v1578_v12, -inf }
0x1936   :  { %1583 = vmax.xlane.f32.xlu0 %v1582_v15 }
0x19c3   :  { %v1584_v16 = vpop.xlane.xlu0 %1583 }
0x19c4   :  { %v1585_v17 = vsub.f32 %v1578_v12, %v1584_v16 }
0x19c6   :  { %v1586_v18 = vmul.f32 1.442695, %v1585_v17 }
0x19c8   :  { %2878 = vpow2.f32 %v1586_v18 }
0x19d2   :  { %v2879_v19 = vpop.eup %2878 }
0x19d3   :  { %v1588_v20 = vsel %vm297_vm2, %v2879_v19, 0.0 }
0x19d4   :  { %1589 = vadd.xlane.f32.xlu1 %v1588_v20 }
0x1a61   :  { %v1590_v21 = vpop.xlane.xlu1 %1589 }
0x1a62   :  { %2880 = vrcp.f32 %v1590_v21 }
0x1a6c   :  { %v2881_v22 = vpop.eup %2880 }
0x1a6d   :  { %v1592_v23 = vmul.f32 %v2881_v22, %v2879_v19 }
0x1a6f   :  { %2609 = vmatmul.mubr.msk.f32.vlgmr.msra.gmra.mrb[12].mxu1 %vm309_vm3, %v1592_v23 }
0x1a70   :  { %2756 = vmatpush3.bf16.msra.mxu1 %v3124_v34  ;;  %2619 = vmatprep.mubr.msk.f32.mxu1 %vm2991_vm0, %v2992_v1 }
0x1a71   :  { %2757 = vmatprep.subr.bf16.mxu1 %v2990_v0 }
0x1a74   :  { %2759 = vmatpush3.bf16.msra.mxu1 %v3128_v37 }
0x1a75   :  { %2772 = vmatprep.subr.bf16.mxu1 %v2990_v0 }
0x1a77   :  { %2620 = vmatmul.mubr.msk.f32.vlgmr.msra.gmra.mrb[12].mxu1 %vm80_vm1, %v1509_v10 }
0x1a78   :  { %2774 = vmatpush3.bf16.msra.mxu1 %v3091_v11  ;;  %2657 = vmatprep.mubr.msk.f32.mxu1 %vm2991_vm0, %v2992_v1 }
0x1a79   :  { %2775 = vmatprep.subr.bf16.mxu1 %v2990_v0 }
0x1a7c   :  { %2777 = vmatpush3.bf16.msra.mxu1 %v3103_v14 }
0x1a7d   :  { %2660 = vmatprep.subr.mxu1 %v2992_v1 }
0x1b4a   :  { %v1733_v24 = vpop.f32.mrb[12].mxu1 }
0x1b4b   :  { %v2790_v25 = vadd.f32 %v1733_v24, %v3152_v46  ;;  %v2621_v26 = vpop.f32.mrb[13].mxu1 }
0x1b4d   :  { %2882 = vtanh.f32 %v2790_v25  ;;  %v2323_v28 = vmul.f32 -1.442695, %v2790_v25 }
0x1b4f   :  { %2884 = vpow2.f32 %v2323_v28 }
0x1b57   :  { %v2883_v27 = vpop.eup %2882 }
0x1b58   :  { %1747 = vrot.lane.b32.xlu0 %v2883_v27, %s2993_s20 }
0x1b59   :  { %v2885_v11 = vpop.eup %2884 }
0x1b5a   :  { %v1741_v29 = vadd.f32 1.0, %v2885_v11 }
0x1b5c   :  { %2886 = vrcp.f32 %v1741_v29 }
0x1b66   :  { %v2887_v30 = vpop.eup %2886 }
0x1b67   :  { %v1745_v14 = vmul.f32 %v2887_v30, %v1499_v5 }
0x1bca   :  { %v1748_v31 = vpop.permute.xlu0 %1747 }
0x1bcb   :  { %v1750_v32 = vmul.f32 %v2887_v30, %v1748_v31 }
0x1bcd   :  { %1752 = vrot.lane.b32.xlu1 %v1750_v32, %s2994_s6 }
0x1c3f   :  { %v1753_v33 = vpop.permute.xlu1 %1752 }
0x1c40   :  { %v1755_v35 = vadd.f32 %v1753_v33, %v1745_v14 }
0x1c42   :  { %2888 = vtanh.f32 %v1755_v35 }
0x1c4c   :  { %v2889_v36 = vpop.eup %2888 }
0x1c4d   :  { %1758 = vrot.lane.b32.xlu0 %v2889_v36, %s2993_s20 }
0x1cbf   :  { %v1759_v39 = vpop.permute.xlu0 %1758 }
0x1cc0   :  { %v1761_v40 = vmul.f32 %v2887_v30, %v1759_v39 }
0x1cc2   :  { %v1762_v41 = vadd.f32 %v1761_v40, %v3159_v63 }
0x1cc4   :  { %1764 = vrot.lane.b32.xlu1 %v1762_v41, %s2994_s6 }
0x1d36   :  { %v1765_v42 = vpop.permute.xlu1 %1764 }
0x1d37   :  { %2631 = vmatmul.mubr.msk.f32.vlgmr.msra.gmra.mrb[16].mxu0 %vm80_vm1, %v1765_v42 }
0x1d38   :  { %2634 = vmatpush3.msra.mxu0 %v3132_v38  ;;  %2635 = vmatprep.mubr.msk.f32.mxu0 %vm2991_vm0, %v2992_v1 }
0x1d39   :  { %2766 = vmatprep.subr.bf16.mxu0 %v2990_v0 }
0x1e0a   :  { %v1834_v43 = vpop.f32.mrb[16].mxu0 }
0x1e0b   :  { %v2632_v44 = vpop.f32.mrb[17].mxu0  ;;  %v1838_v45 = vsel %vm297_vm2, %v1834_v43, -inf }
0x1e0c   :  { %1839 = vmax.xlane.f32.xlu0 %v1838_v45 }
0x1e99   :  { %v1840_v47 = vpop.xlane.xlu0 %1839 }
0x1e9a   :  { %v1841_v48 = vsub.f32 %v1834_v43, %v1840_v47 }
0x1e9c   :  { %v1842_v49 = vmul.f32 1.442695, %v1841_v48 }
0x1e9e   :  { %2890 = vpow2.f32 %v1842_v49 }
0x1ea8   :  { %v2891_v50 = vpop.eup %2890 }
0x1ea9   :  { %v1844_v51 = vsel %vm297_vm2, %v2891_v50, 0.0 }
0x1eaa   :  { %1845 = vadd.xlane.f32.xlu1 %v1844_v51 }
0x1f37   :  { %v1846_v52 = vpop.xlane.xlu1 %1845 }
0x1f38   :  { %2892 = vrcp.f32 %v1846_v52 }
0x1f42   :  { %v2893_v53 = vpop.eup %2892 }
0x1f43   :  { %v1848_v54 = vmul.f32 %v2893_v53, %v2891_v50 }
0x1f45   :  { %2636 = vmatmul.mubr.msk.f32.vlgmr.msra.gmra.mrb[18].mxu0 %vm309_vm3, %v1848_v54 }
0x1f46   :  { %2768 = vmatpush3.bf16.msra.mxu0 %v3124_v34  ;;  %2646 = vmatprep.mubr.msk.f32.mxu0 %vm2991_vm0, %v2992_v1 }
0x1f47   :  { %2769 = vmatprep.subr.bf16.mxu0 %v2990_v0 }
0x1f4a   :  { %2771 = vmatpush3.bf16.msra.mxu0 %v3128_v37 }
0x1f4d   :  { %2647 = vmatmul.mubr.msk.f32.vlgmr.msra.gmra.mrb[18].mxu0 %vm80_vm1, %v1765_v42 }
0x2020   :  { %v1989_v55 = vpop.f32.mrb[18].mxu0 }
0x2021   :  { %v2791_v56 = vadd.f32 %v1989_v55, %v3152_v46  ;;  %v2648_v57 = vpop.f32.mrb[19].mxu0 }
0x2023   :  { %2894 = vtanh.f32 %v2791_v56  ;;  %v2327_v59 = vmul.f32 -1.442695, %v2791_v56 }
0x2025   :  { %2896 = vpow2.f32 %v2327_v59 }
0x202d   :  { %v2895_v58 = vpop.eup %2894 }
0x202e   :  { %2003 = vrot.lane.b32.xlu0 %v2895_v58, %s2993_s20 }
0x202f   :  { %v2897_v60 = vpop.eup %2896 }
0x2030   :  { %v1997_v61 = vadd.f32 1.0, %v2897_v60 }
0x2032   :  { %2898 = vrcp.f32 %v1997_v61 }
0x203c   :  { %v2899_v62 = vpop.eup %2898 }
0x203d   :  { %v2001_v4 = vmul.f32 %v2899_v62, %v1755_v35 }
0x20a0   :  { %v2004_v2 = vpop.permute.xlu0 %2003 }
0x20a1   :  { %v2006_v3 = vmul.f32 %v2899_v62, %v2004_v2 }
0x20a3   :  { %2008 = vrot.lane.b32.xlu1 %v2006_v3, %s2994_s6 }
0x2115   :  { %v2009_v5 = vpop.permute.xlu1 %2008 }
0x2116   :  { %v2011_v6 = vadd.f32 %v2009_v5, %v2001_v4 }
0x2118   :  { %2900 = vtanh.f32 %v2011_v6 }
0x2122   :  { %v2901_v7 = vpop.eup %2900 }
0x2123   :  { %2014 = vrot.lane.b32.xlu0 %v2901_v7, %s2993_s20 }
0x2195   :  { %v2015_v8 = vpop.permute.xlu0 %2014 }
0x2196   :  { %v2017_v9 = vmul.f32 %v2899_v62, %v2015_v8 }
0x2198   :  { %v2018_v10 = vadd.f32 %v2017_v9, %v3159_v63 }
0x219a   :  { %2020 = vrot.lane.b32.xlu1 %v2018_v10, %s2994_s6 }
0x220c   :  { %v2021_v12 = vpop.permute.xlu1 %2020 }
0x220d   :  { %2658 = vmatmul.mubr.msk.f32.vlgmr.msra.gmra.mrb[14].mxu1 %vm80_vm1, %v2021_v12 }
0x220e   :  { %2661 = vmatpush3.msra.mxu1 %v3132_v38  ;;  %2662 = vmatprep.mubr.msk.f32.mxu1 %vm2991_vm0, %v2992_v1 }
0x220f   :  { %2778 = vmatprep.subr.bf16.mxu1 %v2990_v0 }
0x22e0   :  { %v2090_v13 = vpop.f32.mrb[14].mxu1 }
0x22e1   :  { %v2659_v15 = vpop.f32.mrb[15].mxu1  ;;  %v2094_v16 = vsel %vm297_vm2, %v2090_v13, -inf }
0x22e2   :  { %2095 = vmax.xlane.f32.xlu0 %v2094_v16 }
0x236f   :  { %v2096_v17 = vpop.xlane.xlu0 %2095 }
0x2370   :  { %v2097_v18 = vsub.f32 %v2090_v13, %v2096_v17 }
0x2372   :  { %v2098_v19 = vmul.f32 1.442695, %v2097_v18 }
0x2374   :  { %2902 = vpow2.f32 %v2098_v19 }
0x237e   :  { %v2903_v20 = vpop.eup %2902 }
0x237f   :  { %v2100_v21 = vsel %vm297_vm2, %v2903_v20, 0.0 }
0x2380   :  { %2101 = vadd.xlane.f32.xlu1 %v2100_v21 }
0x240d   :  { %v2102_v22 = vpop.xlane.xlu1 %2101 }
0x240e   :  { %2904 = vrcp.f32 %v2102_v22 }
0x2418   :  { %v2905_v38 = vpop.eup %2904 }
0x2419   :  { %v2104_v23 = vmul.f32 %v2905_v38, %v2903_v20 }
0x241b   :  { %2663 = vmatmul.mubr.msk.f32.vlgmr.msra.gmra.mrb[16].mxu1 %vm309_vm3, %v2104_v23 }
0x241c   :  { %2780 = vmatpush3.bf16.msra.mxu1 %v3124_v34  ;;  %2673 = vmatprep.mubr.msk.f32.mxu1 %vm2991_vm0, %v2992_v1 }
0x241d   :  { %2781 = vmatprep.subr.bf16.mxu1 %v2990_v0 }
0x2420   :  { %2783 = vmatpush3.bf16.msra.mxu1 %v3128_v37 }
0x2423   :  { %2674 = vmatmul.mubr.msk.f32.vlgmr.msra.gmra.mrb[16].mxu1 %vm80_vm1, %v2021_v12 }
0x24f6   :  { %v2245_v24 = vpop.f32.mrb[16].mxu1 }
0x24f7   :  { %v2792_v25 = vadd.f32 %v2245_v24, %v3152_v46  ;;  %v2675_v26 = vpop.f32.mrb[17].mxu1 }
0x24f9   :  { %2906 = vtanh.f32 %v2792_v25  ;;  %v2331_v28 = vmul.f32 -1.442695, %v2792_v25 }
0x24fb   :  { %2908 = vpow2.f32 %v2331_v28 }
0x2503   :  { %v2907_v27 = vpop.eup %2906 }
0x2504   :  { %2259 = vrot.lane.b32.xlu0 %v2907_v27, %s2993_s20 }
0x2505   :  { %v2909_v34 = vpop.eup %2908 }
0x2506   :  { %v2253_v11 = vadd.f32 1.0, %v2909_v34 }
0x2508   :  { %2910 = vrcp.f32 %v2253_v11 }
0x2512   :  { %v2911_v1 = vpop.eup %2910 }
0x2513   :  { %v2257_v37 = vmul.f32 %v2911_v1, %v2011_v6 }
0x2576   :  { %v2260_v29 = vpop.permute.xlu0 %2259 }
0x2577   :  { %v2262_v0 = vmul.f32 %v2911_v1, %v2260_v29 }
0x2579   :  { %2264 = vrot.lane.b32.xlu1 %v2262_v0, %s2994_s6 }
0x25eb   :  { %v2265_v30 = vpop.permute.xlu1 %2264 }
0x25ec   :  { %v2267_v31 = vadd.f32 %v2265_v30, %v2257_v37 }
0x25ee   :  { %2912 = vtanh.f32 %v2267_v31 }
0x25f8   :  { %v2913_v46 = vpop.eup %2912 }
0x25f9   :  { %2270 = vrot.lane.b32.xlu0 %v2913_v46, %s2993_s20 }
0x266b   :  { %v2271_v32 = vpop.permute.xlu0 %2270 }
0x266c   :  { %v2273_v14 = vmul.f32 %v2911_v1, %v2271_v32 }
0x266e   :  { %v2274_v33 = vadd.f32 %v2273_v14, %v3159_v63 }
0x2670   :  { %2276 = vrot.lane.b32.xlu1 %v2274_v33, %s2994_s6 }
0x26e2   :  { %v2277_v35 = vpop.permute.xlu1 %2276 }
0x26e3   :  { %2280 = vst.msk [vmem:[#allocation7] sm:$0xf] %vm2279_vm4, %v2277_v35 }
0x26e4   :  { %2969 = shalt.err (!%p2966_p6)
}
0x26e5   :  { %s2970_s26 = scalar_lea.hbm %s3359_s7, 64 }
0x26e6   :  { %p2971_p7 = scmp.ne.s32.totalorder %s3359_s7, %s2970_s26  ;;  %p2974_p8 = scmp.lt.u32.totalorder %s2970_s26, %s3359_s7 }
0x26e8   :  { %p2976_p9 = pnand %p2974_p8, %p2971_p7 }
0x26ea   :  { %2979 = shalt.err (!%p2976_p9)
}
0x26eb   :  { %2290 = dma.vmem_to_hbm [thread:$0]  %s2288_s23, 64, %s3359_s7, [#allocation4]  }
0x26ec   :  { %2984 = dma.done.wait [#allocation4], 64  }
0x26ed   :  { %2985 = vsyncadd [#allocation4], 4294967232 }
0x26ee   :  { %2294 = vsyncpa [#allocation3], 1 }
0x26ef   :  { %2295 = vsyncpa [#allocation6], 1 }
0x26f0   :  { %2296 = vsyncpa [#allocation4], 1 }

</bundles_post_ra>
